<compile_context>
chip_gen: v6e
topology: v6e:2x2x1
jax: 0.10.0
libtpu: 0.0.40
codegen_flags: <defaults>
</compile_context>

<pallas_src>
import jax
import jax.numpy as jnp
from jax import lax
from jax.experimental import pallas as pl
from jax.experimental.pallas import tpu as pltpu

H1, H2 = 512, 256
N_OUT_PAD = 8  # sublane-padded row count of the transposed final (256 -> 1) layer


def _round_up(x, m):
    return (x + m - 1) // m * m


def _vmem_limit_bytes():
    """~3/4 of physical per-core VMEM: 48 MiB on v7x, 96 MiB on v5e/v6e."""
    cap = 128 * 1024 * 1024
    try:
        cap = int(getattr(pltpu.get_tpu_info(), "vmem_capacity_bytes", cap))
    except Exception:
        pass
    return min(112 * 1024 * 1024, cap * 3 // 4)


def _const_spec(block_shape):
    """BlockSpec for a grid-invariant operand: resident in VMEM, single buffer."""
    idx = lambda *_: (0,) * len(block_shape)
    try:
        return pl.BlockSpec(block_shape, idx, pipeline_mode=pl.Buffered(1))
    except TypeError:  # older jax without pipeline_mode on BlockSpec
        return pl.BlockSpec(block_shape, idx)


def _discriminator_kernel(x_ref, w1_ref, b1_ref, w2_ref, b2_ref,
                          w3t_ref, b3_ref, o_ref):
    cdt = w1_ref.dtype  # compute dtype (bf16); cast of the f32 x tile is VPU filler

    # Layer 1: (TB, D) @ (D, 512) + (1, 512), f32 accumulation on the MXU.
    h1 = jnp.dot(x_ref[...].astype(cdt), w1_ref[...],
                 preferred_element_type=jnp.float32) + b1_ref[...]
    h1 = jnp.maximum(h1, 0.2 * h1)                      # LeakyReLU(0.2)

    # Layer 2: (TB, 512) @ (512, 256) + (1, 256).
    h2 = jnp.dot(h1.astype(cdt), w2_ref[...],
                 preferred_element_type=jnp.float32) + b2_ref[...]
    h2 = jnp.maximum(h2, 0.2 * h2)                      # LeakyReLU(0.2)

    # Layer 3 (transposed): (8, 256) contracted with (TB, 256) over the 256
    # dim -> (8, TB) batch-on-lanes.  The real layer is 256 -> 1; only row 0
    # of w3t/b3 is non-zero.  Keeps the output store lane-dense (TB lanes).
    logits = lax.dot_general(
        w3t_ref[...], h2.astype(cdt),
        dimension_numbers=(((1,), (1,)), ((), ())),
        preferred_element_type=jnp.float32) + b3_ref[...]

    # Exact sigmoid; the epilogue is only (8, TB) elements so it is cheap.
    o_ref[...] = 1.0 / (1.0 + jnp.exp(-logits))


def discriminator_forward(img, params, *, compute_dtype=jnp.bfloat16,
                          batch_tile=None):
    """img: (B, C, H, W).  Returns validity (B, 1) float32."""
    w1, b1, w2, b2, w3, b3 = params
    B = img.shape[0]
    D = 1
    for d in img.shape[1:]:
        D *= int(d)

    # nn.Flatten (row-major, matches torch) -- plain JAX glue outside the kernel.
    x = img.reshape(B, D)

    # Batch tile: multiple of 128 (it is the lane dim of the transposed output),
    # capped at 512.  Same default on v5e/v6e/v7x.
    TB = batch_tile if batch_tile is not None else min(512, _round_up(B, 128))
    TB = _round_up(TB, 128)
    B_pad = _round_up(B, TB)
    # TODO(synk): on v7x, pick TB so the grid has >= 2 steps (both TensorCores
    # get work via dimension_semantics=("parallel",)) when B is large.

    # Pad the batch only when needed; x stays in its native dtype (no bf16 copy).
    if B_pad != B:
        x = jnp.pad(x, ((0, B_pad - B), (0, 0)))

    # Matmul operands in compute_dtype; biases stay f32.
    w1c = w1.astype(compute_dtype)
    w2c = w2.astype(compute_dtype)
    # Final layer transposed + zero-padded to 8 rows; row 0 is the real 256->1.
    w3t = jnp.zeros((N_OUT_PAD, H2), compute_dtype).at[:1, :].set(
        w3.T.astype(compute_dtype))
    b1f = b1.astype(jnp.float32).reshape(1, H1)
    b2f = b2.astype(jnp.float32).reshape(1, H2)
    b3p = jnp.zeros((N_OUT_PAD, 1), jnp.float32).at[:1, :1].set(
        b3.reshape(1, 1).astype(jnp.float32))

    grid = (B_pad // TB,)
    cdt_size = jnp.dtype(compute_dtype).itemsize
    cost = pl.CostEstimate(
        flops=int(2 * B_pad * (D * H1 + H1 * H2 + H2 * N_OUT_PAD)),
        transcendentals=int(N_OUT_PAD * B_pad),
        bytes_accessed=int(x.size * x.dtype.itemsize
                           + (w1c.size + w2c.size + w3t.size) * cdt_size
                           + (b1f.size + b2f.size + b3p.size) * 4
                           + N_OUT_PAD * B_pad * 4))

    out = pl.pallas_call(
        _discriminator_kernel,
        out_shape=jax.ShapeDtypeStruct((N_OUT_PAD, B_pad), jnp.float32),
        grid=grid,
        in_specs=[
            pl.BlockSpec((TB, D), lambda i: (i, 0)),  # x tile (double-buffered)
            _const_spec((D, H1)),                     # w1 (resident, 1 buffer)
            _const_spec((1, H1)),                     # b1
            _const_spec((H1, H2)),                    # w2
            _const_spec((1, H2)),                     # b2
            _const_spec((N_OUT_PAD, H2)),             # w3^T (zero-padded rows)
            _const_spec((N_OUT_PAD, 1)),              # b3   (zero-padded rows)
        ],
        out_specs=pl.BlockSpec((N_OUT_PAD, TB), lambda i: (0, i)),
        compiler_params=pltpu.CompilerParams(
            dimension_semantics=("parallel",),        # 2 TCs split the batch on v7x
            vmem_limit_bytes=_vmem_limit_bytes()),
        cost_estimate=cost,
    )(x, w1c, b1f, w2c, b2f, w3t, b3p)

    # TODO(synk): for very large D on v7x (64 MiB VMEM), add an 'arbitrary'
    # K grid axis with an f32 (TB, 512) accumulator scratch for layer 1
    # instead of keeping the whole (D, 512) slab resident.

    # Row 0 of the (8, B_pad) batch-on-lanes output carries the real logits.
    return out[0, :B].reshape(B, 1)


def init_params(key, in_features):
    """Deterministic init mimicking PyTorch Linear default U(-1/sqrt(fan_in), +)."""
    def linear(k, fan_in, fan_out):
        kw, kb = jax.random.split(k)
        bound = 1.0 / jnp.sqrt(fan_in)
        w = jax.random.uniform(kw, (fan_in, fan_out), jnp.float32, -bound, bound)
        b = jax.random.uniform(kb, (1, fan_out), jnp.float32, -bound, bound)
        return w, b

    k1, k2, k3 = jax.random.split(key, 3)
    w1, b1 = linear(k1, in_features, H1)
    w2, b2 = linear(k2, H1, H2)
    w3, b3 = linear(k3, H2, 1)
    return (w1, b1, w2, b2, w3, b3)


def reference_forward(img, params, compute_dtype=None):
    """Pure-JAX reference; optional operand cast to mirror kernel precision."""
    w1, b1, w2, b2, w3, b3 = params
    cast = (lambda a: a.astype(compute_dtype)) if compute_dtype is not None else (lambda a: a)
    x = img.reshape(img.shape[0], -1)
    h1 = jnp.dot(cast(x), cast(w1), preferred_element_type=jnp.float32) + b1
    h1 = jnp.where(h1 > 0, h1, 0.2 * h1)
    h2 = jnp.dot(cast(h1), cast(w2), preferred_element_type=jnp.float32) + b2
    h2 = jnp.where(h2 > 0, h2, 0.2 * h2)
    logits = jnp.dot(cast(h2), cast(w3), preferred_element_type=jnp.float32) + b3
    return jax.nn.sigmoid(logits)


if __name__ == "__main__":
    key = jax.random.PRNGKey(0)
    k_img, k_params = jax.random.split(key)

    # Small shapes consistent with the module: img_shape = (1, 16, 16), batch = 2
    B, C, H, W = 2, 1, 16, 16
    img = jax.random.normal(k_img, (B, C, H, W), jnp.float32)
    params = init_params(k_params, C * H * W)

    out = jax.block_until_ready(discriminator_forward(img, params))
    assert out.shape == (B, 1), out.shape

    # Same-precision reference (bf16 operands, f32 accumulate) -> tight check.
    ref_cast = reference_forward(img, params, compute_dtype=jnp.bfloat16)
    assert jnp.allclose(out, ref_cast, atol=2e-3, rtol=2e-3), (out, ref_cast)

    # Full-f32 reference -> semantic sanity check (bf16 operand tolerance).
    ref_f32 = reference_forward(img, params)
    assert jnp.allclose(out, ref_f32, atol=5e-2, rtol=5e-2), (out, ref_f32)

    print("KERNEL_OK")
</pallas_src>

<mosaic_0001>
module attributes {stable_mosaic.version = 11 : i64} {
  func.func @_discriminator_kernel(%arg0: i32, %arg1: memref<128x256xf32, #tpu.memory_space<vmem>>, %arg2: memref<256x512xbf16, #tpu.memory_space<vmem>>, %arg3: memref<1x512xf32, #tpu.memory_space<vmem>>, %arg4: memref<512x256xbf16, #tpu.memory_space<vmem>>, %arg5: memref<1x256xf32, #tpu.memory_space<vmem>>, %arg6: memref<8x256xbf16, #tpu.memory_space<vmem>>, %arg7: memref<8x1xf32, #tpu.memory_space<vmem>>, %arg8: memref<8x128xf32, #tpu.memory_space<vmem>>) attributes {dimension_semantics = [#tpu.dimension_semantics<parallel>], iteration_bounds = array<i64: 1>, scalar_prefetch = 0 : i64, scratch_operands = 0 : i64, tpu.core_type = #tpu.core_type<tc>, window_params = [{transform_indices = @transform_0, window_bounds = array<i64: 128, 256>}, {pipeline_mode = #tpu.pipeline_mode<synchronous>, transform_indices = @transform_1, window_bounds = array<i64: 256, 512>}, {pipeline_mode = #tpu.pipeline_mode<synchronous>, transform_indices = @transform_2, window_bounds = array<i64: 1, 512>}, {pipeline_mode = #tpu.pipeline_mode<synchronous>, transform_indices = @transform_3, window_bounds = array<i64: 512, 256>}, {pipeline_mode = #tpu.pipeline_mode<synchronous>, transform_indices = @transform_4, window_bounds = array<i64: 1, 256>}, {pipeline_mode = #tpu.pipeline_mode<synchronous>, transform_indices = @transform_5, window_bounds = array<i64: 8, 256>}, {pipeline_mode = #tpu.pipeline_mode<synchronous>, transform_indices = @transform_6, window_bounds = array<i64: 8, 1>}, {transform_indices = @transform_7, window_bounds = array<i64: 8, 128>}]} {
    %c0 = arith.constant 0 : index
    %c0_0 = arith.constant 0 : index
    %0 = vector.load %arg1[%c0, %c0_0] : memref<128x256xf32, #tpu.memory_space<vmem>>, vector<128x256xf32>
    %1 = arith.truncf %0 : vector<128x256xf32> to vector<128x256xbf16>
    %c0_1 = arith.constant 0 : index
    %c0_2 = arith.constant 0 : index
    %2 = vector.load %arg2[%c0_1, %c0_2] : memref<256x512xbf16, #tpu.memory_space<vmem>>, vector<256x512xbf16>
    %cst = arith.constant dense<0.000000e+00> : vector<128x512xf32>
    %3 = tpu.matmul %1, %2, %cst {dimension_numbers = #tpu.dot_dimension_numbers<[1], [0], [0], [1], [0, 0, 1, 1], [], []>} : vector<128x256xbf16>, vector<256x512xbf16>, vector<128x512xf32> -> vector<128x512xf32>
    %c0_3 = arith.constant 0 : index
    %c0_4 = arith.constant 0 : index
    %4 = vector.load %arg3[%c0_3, %c0_4] : memref<1x512xf32, #tpu.memory_space<vmem>>, vector<1x512xf32>
    %5 = vector.broadcast %4 : vector<1x512xf32> to vector<128x512xf32>
    %6 = arith.addf %3, %5 : vector<128x512xf32>
    %cst_5 = arith.constant 2.000000e-01 : f32
    %7 = vector.broadcast %cst_5 : f32 to vector<128x512xf32>
    %8 = arith.mulf %7, %6 : vector<128x512xf32>
    %9 = arith.maximumf %6, %8 : vector<128x512xf32>
    %10 = arith.truncf %9 : vector<128x512xf32> to vector<128x512xbf16>
    %c0_6 = arith.constant 0 : index
    %c0_7 = arith.constant 0 : index
    %11 = vector.load %arg4[%c0_6, %c0_7] : memref<512x256xbf16, #tpu.memory_space<vmem>>, vector<512x256xbf16>
    %cst_8 = arith.constant dense<0.000000e+00> : vector<128x256xf32>
    %12 = tpu.matmul %10, %11, %cst_8 {dimension_numbers = #tpu.dot_dimension_numbers<[1], [0], [0], [1], [0, 0, 1, 1], [], []>} : vector<128x512xbf16>, vector<512x256xbf16>, vector<128x256xf32> -> vector<128x256xf32>
    %c0_9 = arith.constant 0 : index
    %c0_10 = arith.constant 0 : index
    %13 = vector.load %arg5[%c0_9, %c0_10] : memref<1x256xf32, #tpu.memory_space<vmem>>, vector<1x256xf32>
    %14 = vector.broadcast %13 : vector<1x256xf32> to vector<128x256xf32>
    %15 = arith.addf %12, %14 : vector<128x256xf32>
    %cst_11 = arith.constant 2.000000e-01 : f32
    %16 = vector.broadcast %cst_11 : f32 to vector<128x256xf32>
    %17 = arith.mulf %16, %15 : vector<128x256xf32>
    %18 = arith.maximumf %15, %17 : vector<128x256xf32>
    %c0_12 = arith.constant 0 : index
    %c0_13 = arith.constant 0 : index
    %19 = vector.load %arg6[%c0_12, %c0_13] : memref<8x256xbf16, #tpu.memory_space<vmem>>, vector<8x256xbf16>
    %20 = arith.truncf %18 : vector<128x256xf32> to vector<128x256xbf16>
    %cst_14 = arith.constant dense<0.000000e+00> : vector<8x128xf32>
    %21 = tpu.matmul %19, %20, %cst_14 {dimension_numbers = #tpu.dot_dimension_numbers<[1], [1], [0], [0], [0, 0, 1, 0], [], []>} : vector<8x256xbf16>, vector<128x256xbf16>, vector<8x128xf32> -> vector<8x128xf32>
    %c0_15 = arith.constant 0 : index
    %c0_16 = arith.constant 0 : index
    %22 = vector.load %arg7[%c0_15, %c0_16] : memref<8x1xf32, #tpu.memory_space<vmem>>, vector<8x1xf32>
    %23 = vector.broadcast %22 : vector<8x1xf32> to vector<8x128xf32>
    %24 = arith.addf %21, %23 : vector<8x128xf32>
    %cst_17 = arith.constant 0.000000e+00 : f32
    %25 = vector.broadcast %cst_17 : f32 to vector<8x128xf32>
    %26 = arith.subf %25, %24 : vector<8x128xf32>
    %27 = math.exp %26 : vector<8x128xf32>
    %cst_18 = arith.constant 1.000000e+00 : f32
    %28 = vector.broadcast %cst_18 : f32 to vector<8x128xf32>
    %29 = arith.addf %28, %27 : vector<8x128xf32>
    %cst_19 = arith.constant 1.000000e+00 : f32
    %30 = vector.broadcast %cst_19 : f32 to vector<8x128xf32>
    %31 = arith.divf %30, %29 : vector<8x128xf32>
    %c0_20 = arith.constant 0 : index
    %c0_21 = arith.constant 0 : index
    %32 = vector.load %arg8[%c0_20, %c0_21] : memref<8x128xf32, #tpu.memory_space<vmem>>, vector<8x128xf32>
    tpu.vector_store %arg8[%c0_20, %c0_21], %31 {strides = array<i32>} : memref<8x128xf32, #tpu.memory_space<vmem>>, vector<8x128xf32>,
    return
  }
  func.func @transform_0(%arg0: i32) -> (i32, i32) {
    %c0_i32 = arith.constant 0 : i32
    %c0_i32_0 = arith.constant 0 : i32
    return %arg0, %c0_i32 : i32, i32
  }
  func.func @transform_1(%arg0: i32) -> (i32, i32) {
    %c0_i32 = arith.constant 0 : i32
    %c0_i32_0 = arith.constant 0 : i32
    %c0_i32_1 = arith.constant 0 : i32
    return %c0_i32, %c0_i32_0 : i32, i32
  }
  func.func @transform_2(%arg0: i32) -> (i32, i32) {
    %c0_i32 = arith.constant 0 : i32
    %c0_i32_0 = arith.constant 0 : i32
    %c0_i32_1 = arith.constant 0 : i32
    return %c0_i32, %c0_i32_0 : i32, i32
  }
  func.func @transform_3(%arg0: i32) -> (i32, i32) {
    %c0_i32 = arith.constant 0 : i32
    %c0_i32_0 = arith.constant 0 : i32
    %c0_i32_1 = arith.constant 0 : i32
    return %c0_i32, %c0_i32_0 : i32, i32
  }
  func.func @transform_4(%arg0: i32) -> (i32, i32) {
    %c0_i32 = arith.constant 0 : i32
    %c0_i32_0 = arith.constant 0 : i32
    %c0_i32_1 = arith.constant 0 : i32
    return %c0_i32, %c0_i32_0 : i32, i32
  }
  func.func @transform_5(%arg0: i32) -> (i32, i32) {
    %c0_i32 = arith.constant 0 : i32
    %c0_i32_0 = arith.constant 0 : i32
    %c0_i32_1 = arith.constant 0 : i32
    return %c0_i32, %c0_i32_0 : i32, i32
  }
  func.func @transform_6(%arg0: i32) -> (i32, i32) {
    %c0_i32 = arith.constant 0 : i32
    %c0_i32_0 = arith.constant 0 : i32
    %c0_i32_1 = arith.constant 0 : i32
    return %c0_i32, %c0_i32_0 : i32, i32
  }
  func.func @transform_7(%arg0: i32) -> (i32, i32) {
    %c0_i32 = arith.constant 0 : i32
    %c0_i32_0 = arith.constant 0 : i32
    return %c0_i32, %arg0 : i32, i32
  }
}

</mosaic_0001>

<bundles_post_ra>
// kernel: tpu_custom_call.1
= control target key start
LH: loop header
LB: loop body
LE: loop exit
PB: predicated region body
PF: predicated region fallthrough
CT: control target
= control target key end

     0   :  { %12 = vsyncpa [#allocation3], 0  ;;  %s2396_s0 = inlined_call_operand.hbm [shape: f32[128,256], index: 0, kind: input, shape index: {}]   ;;  %s2397_s1 = inlined_call_operand.hbm [shape: bf16[256,512], index: 1, kind: input, shape index: {}]   ;;  %s2398_s2 = inlined_call_operand.vmem [shape: f32[1,512], index: 2, kind: input, shape index: {}]   ;;  %s2399_s3 = inlined_call_operand.hbm [shape: bf16[512,256], index: 3, kind: input, shape index: {}]   ;;  %s2400_s4 = inlined_call_operand.vmem [shape: f32[1,256], index: 4, kind: input, shape index: {}]   ;;  %s2401_s5 = inlined_call_operand.vmem [shape: bf16[8,256], index: 5, kind: input, shape index: {}]   ;;  %s2402_s6 = inlined_call_operand.vmem [shape: f32[8,1], index: 6, kind: input, shape index: {}]   ;;  %s2403_s7 = inlined_call_operand.hbm [shape: f32[8,128], index: 7, kind: output, shape index: {}]  }
   0x1   :  { %13 = vsyncpa [#allocation6], 0 }
   0x2   :  { %14 = vsyncpa [#allocation4], 0  ;;  %s2112_s24 = smov [#allocation5]   ;;  %s2113_s26 = smov [#allocation2]  }
   0x3   :  { %s32_s25 = sshll.u32 %s2112_s24, 4  ;;  %s20_s27 = sshll.u32 %s2113_s26, 4  ;;  %s33_s25 = int_to_ptr.vmem [resolvable:$true] %s32_s25  ;;  %s21_s27 = int_to_ptr.vmem [resolvable:$true] %s20_s27 }
   0x4   :  { %s2034_s28 = scalar_lea.vmem %s33_s25, 8192  ;;  %p2039_p1 = scmp.lt.s32.totalorder %s33_s25, %s33_s25 }
   0x5   :  { %p2035_p0 = scmp.ne.s32.totalorder %s33_s25, %s2034_s28  ;;  %p2040_p2 = scmp.lt.s32.totalorder %s2034_s28, %s2034_s28 }
   0x7   :  { %p2041_p3 = por %p2040_p2, %p2039_p1 }
   0x9   :  { %p2042_p4 = pnand %p2041_p3, %p2035_p0 }
   0xb   :  { %2045 = shalt.err (!%p2042_p4)
}
   0xc   :  { %s2114_s29 = smov 256   ;;  %s2115_s30 = smov 16  }
   0xd   :  { %38 = dma.hbm_to_vmem [thread:$0]  %s2397_s1, 8192, %s33_s25, [#allocation6], %s2114_s29, %s2114_s29, %s2115_s30  }
   0xe   :  { %s2054_s10 = scalar_lea.vmem %s21_s27, 4096  ;;  %p2059_p6 = scmp.lt.s32.totalorder %s21_s27, %s21_s27 }
   0xf   :  { %p2055_p5 = scmp.ne.s32.totalorder %s21_s27, %s2054_s10  ;;  %p2060_p7 = scmp.lt.s32.totalorder %s2054_s10, %s2054_s10 }
  0x11   :  { %p2061_p8 = por %p2060_p7, %p2059_p6 }
  0x13   :  { %p2062_p9 = pnand %p2061_p8, %p2055_p5 }
  0x15   :  { %2065 = shalt.err (!%p2062_p9)
}
  0x16   :  { %26 = dma.hbm_to_vmem [thread:$0]  %s2396_s0, 4096, %s21_s27, [#allocation3], %s2114_s29, %s2114_s29, %s2115_s30  }
  0x17   :  { %s2116_s13 = smov [#allocation7]  }
  0x18   :  { %s46_s14 = sshll.u32 %s2116_s13, 4  ;;  %s47_s14 = int_to_ptr.vmem [resolvable:$true] %s46_s14 }
  0x19   :  { %s2074_s15 = scalar_lea.vmem %s47_s14, 8192  ;;  %p2079_p11 = scmp.lt.s32.totalorder %s47_s14, %s47_s14 }
  0x1a   :  { %p2075_p10 = scmp.ne.s32.totalorder %s47_s14, %s2074_s15  ;;  %p2080_p12 = scmp.lt.s32.totalorder %s2074_s15, %s2074_s15 }
  0x1c   :  { %p2081_p13 = por %p2080_p12, %p2079_p11 }
  0x1e   :  { %p2082_p0 = pnand %p2081_p13, %p2075_p10 }
  0x20   :  { %2085 = shalt.err (!%p2082_p0)
}
  0x21   :  { %s2117_s1 = smov 128   ;;  %s2118_s16 = smov 8  }
  0x22   :  { %52 = dma.hbm_to_vmem [thread:$0]  %s2399_s3, 8192, %s47_s14, [#allocation6], %s2117_s1, %s2117_s1, %s2118_s16  }
  0x23   :  { %2106 = dma.done.wait [#allocation3], 4096  }
  0x24   :  { %2107 = vsyncadd [#allocation3], 4294963200 }
  0x25   :  { %2108 = dma.done.wait [#allocation6], 16384  }
  0x26   :  { %2109 = vsyncadd [#allocation6], 4294950912  ;;  %v1828_v0 = vld [vmem:[#allocation5 + $0xe4] ss:$16 sps:$4 sm:$0xff]   ;;  %v1830_v1 = vld [vmem:[#allocation5 + $0xec] ss:$16 sps:$4 sm:$0xff]  }
  0x27   :  { %523 = vmatprep.subr.bf16.mxu0 %v1828_v0  ;;  %v1832_v2 = vld [vmem:[#allocation5 + $0xe0] ss:$16 sps:$4 sm:$0xff]   ;;  %v1833_v3 = vld [vmem:[#allocation5 + $0xe8] ss:$16 sps:$4 sm:$0xff]   ;;  %636 = vmatprep.subr.bf16.mxu1 %v1830_v1  ;;  %v1834_v4 = vld [vmem:[#allocation5 + $0xc4] ss:$16 sps:$4 sm:$0xff]  }
  0x28   :  { %524 = vmatpush1.bf16.msra.mxu0 %v1832_v2  ;;  %637 = vmatpush1.bf16.msra.mxu1 %v1833_v3  ;;  %v1836_v5 = vld [vmem:[#allocation5 + $0xcc] ss:$16 sps:$4 sm:$0xff]   ;;  %v1838_v6 = vld [vmem:[#allocation5 + $0xc0] ss:$16 sps:$4 sm:$0xff]   ;;  %v1839_v7 = vld [vmem:[#allocation5 + $0xc8] ss:$16 sps:$4 sm:$0xff]  }
  0x29   :  { %525 = vmatprep.subr.bf16.mxu0 %v1834_v4  ;;  %638 = vmatprep.subr.bf16.mxu1 %v1836_v5  ;;  %v1840_v8 = vld [vmem:[#allocation5 + $0xa4] ss:$16 sps:$4 sm:$0xff]   ;;  %v1842_v9 = vld [vmem:[#allocation5 + $0xac] ss:$16 sps:$4 sm:$0xff]   ;;  %v1844_v10 = vld [vmem:[#allocation5 + $0xa0] ss:$16 sps:$4 sm:$0xff]  }
  0x2a   :  { %v1845_v11 = vld [vmem:[#allocation5 + $0xa8] ss:$16 sps:$4 sm:$0xff]   ;;  %v1846_v12 = vld [vmem:[#allocation5 + $0x84] ss:$16 sps:$4 sm:$0xff]   ;;  %v1848_v13 = vld [vmem:[#allocation5 + $0x8c] ss:$16 sps:$4 sm:$0xff]  }
  0x2b   :  { %v1850_v14 = vld [vmem:[#allocation5 + $0x80] ss:$16 sps:$4 sm:$0xff]   ;;  %v1851_v15 = vld [vmem:[#allocation5 + $0x88] ss:$16 sps:$4 sm:$0xff]   ;;  %v1852_v16 = vld [vmem:[#allocation5 + $0x64] ss:$16 sps:$4 sm:$0xff]  }
  0x2c   :  { %526 = vmatpush1.bf16.msra.mxu0 %v1838_v6  ;;  %639 = vmatpush1.bf16.msra.mxu1 %v1839_v7  ;;  %v1854_v17 = vld [vmem:[#allocation5 + $0x6c] ss:$16 sps:$4 sm:$0xff]   ;;  %v1856_v18 = vld [vmem:[#allocation5 + $0x60] ss:$16 sps:$4 sm:$0xff]   ;;  %v1857_v19 = vld [vmem:[#allocation5 + $0x68] ss:$16 sps:$4 sm:$0xff]  }
  0x2d   :  { %527 = vmatprep.subr.bf16.mxu0 %v1840_v8  ;;  %640 = vmatprep.subr.bf16.mxu1 %v1842_v9  ;;  %v1858_v20 = vld [vmem:[#allocation5 + $0x44] ss:$16 sps:$4 sm:$0xff]   ;;  %v1860_v21 = vld [vmem:[#allocation5 + $0x4c] ss:$16 sps:$4 sm:$0xff]   ;;  %v1862_v22 = vld [vmem:[#allocation5 + $0x40] ss:$16 sps:$4 sm:$0xff]  }
  0x2e   :  { %v1863_v23 = vld [vmem:[#allocation5 + $0x48] ss:$16 sps:$4 sm:$0xff]   ;;  %v1864_v24 = vld [vmem:[#allocation5 + $0x24] ss:$16 sps:$4 sm:$0xff]   ;;  %v1866_v25 = vld [vmem:[#allocation5 + $0x2c] ss:$16 sps:$4 sm:$0xff]  }
  0x2f   :  { %v1868_v26 = vld [vmem:[#allocation5 + $0x20] ss:$16 sps:$4 sm:$0xff]   ;;  %v1869_v27 = vld [vmem:[#allocation5 + $0x28] ss:$16 sps:$4 sm:$0xff]   ;;  %v1870_v28 = vld [vmem:[#allocation5 + $0x4] ss:$16 sps:$4 sm:$0xff]  }
  0x30   :  { %528 = vmatpush1.bf16.msra.mxu0 %v1844_v10  ;;  %641 = vmatpush1.bf16.msra.mxu1 %v1845_v11  ;;  %v1872_v29 = vld [vmem:[#allocation5 + $0xc] ss:$16 sps:$4 sm:$0xff]   ;;  %v1874_v30 = vld [vmem:[#allocation5] ss:$16 sps:$4 sm:$0xff]   ;;  %v1875_v31 = vld [vmem:[#allocation5 + $0x8] ss:$16 sps:$4 sm:$0xff]  }
  0x31   :  { %529 = vmatprep.subr.bf16.mxu0 %v1846_v12  ;;  %642 = vmatprep.subr.bf16.mxu1 %v1848_v13  ;;  %v1876_v32 = vld [vmem:[#allocation5 + $0x1e4] ss:$16 sps:$4 sm:$0xff]   ;;  %v1878_v33 = vld [vmem:[#allocation5 + $0x1ec] ss:$16 sps:$4 sm:$0xff]   ;;  %v1880_v34 = vld [vmem:[#allocation5 + $0x1e0] ss:$16 sps:$4 sm:$0xff]  }
  0x32   :  { %v1881_v35 = vld [vmem:[#allocation5 + $0x1e8] ss:$16 sps:$4 sm:$0xff]   ;;  %v1882_v36 = vld [vmem:[#allocation5 + $0x1c4] ss:$16 sps:$4 sm:$0xff]   ;;  %v1884_v37 = vld [vmem:[#allocation5 + $0x1cc] ss:$16 sps:$4 sm:$0xff]  }
  0x33   :  { %v1886_v38 = vld [vmem:[#allocation5 + $0x1c0] ss:$16 sps:$4 sm:$0xff]   ;;  %v1887_v39 = vld [vmem:[#allocation5 + $0x1c8] ss:$16 sps:$4 sm:$0xff]   ;;  %v1888_v40 = vld [vmem:[#allocation5 + $0x1a4] ss:$16 sps:$4 sm:$0xff]  }
  0x34   :  { %530 = vmatpush1.bf16.msra.mxu0 %v1850_v14  ;;  %643 = vmatpush1.bf16.msra.mxu1 %v1851_v15  ;;  %v1890_v41 = vld [vmem:[#allocation5 + $0x1ac] ss:$16 sps:$4 sm:$0xff]   ;;  %v1892_v42 = vld [vmem:[#allocation5 + $0x1a0] ss:$16 sps:$4 sm:$0xff]   ;;  %v1893_v43 = vld [vmem:[#allocation5 + $0x1a8] ss:$16 sps:$4 sm:$0xff]  }
  0x35   :  { %531 = vmatprep.subr.bf16.mxu0 %v1852_v16  ;;  %644 = vmatprep.subr.bf16.mxu1 %v1854_v17  ;;  %v1894_v44 = vld [vmem:[#allocation5 + $0x184] ss:$16 sps:$4 sm:$0xff]   ;;  %v1896_v45 = vld [vmem:[#allocation5 + $0x18c] ss:$16 sps:$4 sm:$0xff]   ;;  %v1898_v48 = vld [vmem:[#allocation5 + $0x180] ss:$16 sps:$4 sm:$0xff]  }
  0x36   :  { %v70_v46 = vld [vmem:[#allocation2 + $0x8] sm:$0xff]  ;;  %v72_v47 = vld [vmem:[#allocation2 + $0x18] sm:$0xff]  ;;  %v1900_v51 = vld [vmem:[#allocation5 + $0x164] ss:$16 sps:$4 sm:$0xff]  }
  0x37   :  { %v1899_v49 = vld [vmem:[#allocation5 + $0x188] ss:$16 sps:$4 sm:$0xff]   ;;  %v102_v50 = vpack.c.bf16 %v72_v47, %v70_v46  ;;  %v1902_v52 = vld [vmem:[#allocation5 + $0x16c] ss:$16 sps:$4 sm:$0xff]   ;;  %v1904_v53 = vld [vmem:[#allocation5 + $0x160] ss:$16 sps:$4 sm:$0xff]  }
  0x38   :  { %532 = vmatpush1.bf16.msra.mxu0 %v1856_v18  ;;  %645 = vmatpush1.bf16.msra.mxu1 %v1857_v19  ;;  %v1905_v54 = vld [vmem:[#allocation5 + $0x168] ss:$16 sps:$4 sm:$0xff]   ;;  %v1906_v55 = vld [vmem:[#allocation5 + $0x144] ss:$16 sps:$4 sm:$0xff]   ;;  %v1908_v56 = vld [vmem:[#allocation5 + $0x14c] ss:$16 sps:$4 sm:$0xff]  }
  0x39   :  { %533 = vmatprep.subr.bf16.mxu0 %v1858_v20  ;;  %646 = vmatprep.subr.bf16.mxu1 %v1860_v21  ;;  %v1910_v57 = vld [vmem:[#allocation5 + $0x140] ss:$16 sps:$4 sm:$0xff]   ;;  %v1911_v58 = vld [vmem:[#allocation5 + $0x148] ss:$16 sps:$4 sm:$0xff]   ;;  %v1912_v59 = vld [vmem:[#allocation5 + $0x124] ss:$16 sps:$4 sm:$0xff]  }
  0x3a   :  { %555 = vmatprep.mubr.bf16.mxu0 %v102_v50  ;;  %668 = vmatprep.mubr.bf16.mxu1 %v102_v50  ;;  %v1914_v60 = vld [vmem:[#allocation5 + $0x12c] ss:$16 sps:$4 sm:$0xff]   ;;  %v1916_v61 = vld [vmem:[#allocation5 + $0x120] ss:$16 sps:$4 sm:$0xff]   ;;  %v1917_v62 = vld [vmem:[#allocation5 + $0x128] ss:$16 sps:$4 sm:$0xff]  }
  0x3b   :  { %v1918_v63 = vld [vmem:[#allocation5 + $0x104] ss:$16 sps:$4 sm:$0xff]   ;;  %v1920_v0 = vld [vmem:[#allocation5 + $0x10c] ss:$16 sps:$4 sm:$0xff]   ;;  %v1922_v1 = vld [vmem:[#allocation5 + $0x100] ss:$16 sps:$4 sm:$0xff]  }
  0x3c   :  { %534 = vmatpush1.bf16.msra.mxu0 %v1862_v22  ;;  %647 = vmatpush1.bf16.msra.mxu1 %v1863_v23  ;;  %v1923_v2 = vld [vmem:[#allocation5 + $0x108] ss:$16 sps:$4 sm:$0xff]   ;;  %v69_v3 = vld [vmem:[#allocation2] sm:$0xff]  ;;  %v71_v4 = vld [vmem:[#allocation2 + $0x10] sm:$0xff] }
  0x3d   :  { %535 = vmatprep.subr.bf16.mxu0 %v1864_v24  ;;  %648 = vmatprep.subr.bf16.mxu1 %v1866_v25  ;;  %v74_v5 = vld [vmem:[#allocation2 + $0x28] sm:$0xff]  ;;  %v76_v6 = vld [vmem:[#allocation2 + $0x38] sm:$0xff]  ;;  %v101_v9 = vpack.c.bf16 %v71_v4, %v69_v3  ;;  %v73_v13 = vld [vmem:[#allocation2 + $0x20] sm:$0xff] }
  0x3e   :  { %v1926_v7 = vld [vmem:[#allocation7 + $0x74] ss:$8 sps:$4 sm:$0xff]   ;;  %v104_v10 = vpack.c.bf16 %v76_v6, %v74_v5  ;;  %v1924_v11 = vld [vmem:[#allocation7 + $0x70] ss:$8 sps:$4 sm:$0xff]   ;;  %v1932_v15 = vld [vmem:[#allocation7 + $0x64] ss:$8 sps:$4 sm:$0xff]  }
  0x3f   :  { %v1929_v8 = vld [vmem:[#allocation7 + $0x174] ss:$8 sps:$4 sm:$0xff]   ;;  %v1927_v12 = vld [vmem:[#allocation7 + $0x170] ss:$8 sps:$4 sm:$0xff]   ;;  %v1935_v16 = vld [vmem:[#allocation7 + $0x164] ss:$8 sps:$4 sm:$0xff]  }
  0x40   :  { %536 = vmatpush1.bf16.msra.mxu0 %v1868_v26  ;;  %649 = vmatpush1.bf16.msra.mxu1 %v1869_v27  ;;  %v75_v14 = vld [vmem:[#allocation2 + $0x30] sm:$0xff]  ;;  %v78_v17 = vld [vmem:[#allocation2 + $0x48] sm:$0xff]  ;;  %v80_v18 = vld [vmem:[#allocation2 + $0x58] sm:$0xff] }
  0x41   :  { %537 = vmatprep.subr.bf16.mxu0 %v1870_v28  ;;  %650 = vmatprep.subr.bf16.mxu1 %v1872_v29  ;;  %v1930_v19 = vld [vmem:[#allocation7 + $0x60] ss:$8 sps:$4 sm:$0xff]   ;;  %v1938_v21 = vld [vmem:[#allocation7 + $0x54] ss:$8 sps:$4 sm:$0xff]   ;;  %v103_v23 = vpack.c.bf16 %v75_v14, %v73_v13  ;;  %v106_v24 = vpack.c.bf16 %v80_v18, %v78_v17  ;;  %v1936_v25 = vld [vmem:[#allocation7 + $0x50] ss:$8 sps:$4 sm:$0xff]  }
  0x42   :  { %v1933_v20 = vld [vmem:[#allocation7 + $0x160] ss:$8 sps:$4 sm:$0xff]   ;;  %v1941_v22 = vld [vmem:[#allocation7 + $0x154] ss:$8 sps:$4 sm:$0xff]   ;;  %v1939_v26 = vld [vmem:[#allocation7 + $0x150] ss:$8 sps:$4 sm:$0xff]  }
  0x43   :  { %v77_v27 = vld [vmem:[#allocation2 + $0x40] sm:$0xff]  ;;  %v79_v28 = vld [vmem:[#allocation2 + $0x50] sm:$0xff]  ;;  %v88_v46 = vld [vmem:[#allocation2 + $0x98] sm:$0xff] }
  0x44   :  { %538 = vmatpush1.bf16.msra.mxu0 %v1874_v30  ;;  %651 = vmatpush1.bf16.msra.mxu1 %v1875_v31  ;;  %v1944_v29 = vld [vmem:[#allocation7 + $0x44] ss:$8 sps:$4 sm:$0xff]   ;;  %v1954_v47 = vld [vmem:[#allocation7 + $0x20] ss:$8 sps:$4 sm:$0xff]   ;;  %v1965_v50 = vld [vmem:[#allocation7 + $0x114] ss:$8 sps:$4 sm:$0xff]  }
  0x45   :  { %539 = vmatprep.subr.bf16.mxu0 %v1876_v32  ;;  %652 = vmatprep.subr.bf16.mxu1 %v1878_v33  ;;  %v1947_v30 = vld [vmem:[#allocation7 + $0x144] ss:$8 sps:$4 sm:$0xff]   ;;  %v84_v32 = vld [vmem:[#allocation2 + $0x78] sm:$0xff]  ;;  %v1942_v33 = vld [vmem:[#allocation7 + $0x40] ss:$8 sps:$4 sm:$0xff]  }
  0x46   :  { %v82_v31 = vld [vmem:[#allocation2 + $0x68] sm:$0xff]  ;;  %v1972_v3 = vld [vmem:[#allocation7 + $0xf0] ss:$8 sps:$4 sm:$0xff]   ;;  %v1986_v13 = vld [vmem:[#allocation7 + $0xd4] ss:$8 sps:$4 sm:$0xff]  }
  0x47   :  { %v1975_v4 = vld [vmem:[#allocation7 + $0x1f0] ss:$8 sps:$4 sm:$0xff]   ;;  %v1980_v5 = vld [vmem:[#allocation7 + $0xe4] ss:$8 sps:$4 sm:$0xff]   ;;  %v1989_v14 = vld [vmem:[#allocation7 + $0x1d4] ss:$8 sps:$4 sm:$0xff]  }
  0x48   :  { %540 = vmatpush2.bf16.msra.mxu0 %v1880_v34  ;;  %653 = vmatpush2.bf16.msra.mxu1 %v1881_v35  ;;  %v1945_v34 = vld [vmem:[#allocation7 + $0x140] ss:$8 sps:$4 sm:$0xff]   ;;  %v1950_v35 = vld [vmem:[#allocation7 + $0x34] ss:$8 sps:$4 sm:$0xff]   ;;  %v1983_v6 = vld [vmem:[#allocation7 + $0x1e4] ss:$8 sps:$4 sm:$0xff]  }
  0x49   :  { %541 = vmatprep.subr.bf16.mxu0 %v1882_v36  ;;  %654 = vmatprep.subr.bf16.mxu1 %v1884_v37  ;;  %v1953_v36 = vld [vmem:[#allocation7 + $0x134] ss:$8 sps:$4 sm:$0xff]   ;;  %v105_v37 = vpack.c.bf16 %v79_v28, %v77_v27  ;;  %v1984_v17 = vld [vmem:[#allocation7 + $0xd0] ss:$8 sps:$4 sm:$0xff]  }
  0x4a   :  { %v1987_v18 = vld [vmem:[#allocation7 + $0x1d0] ss:$8 sps:$4 sm:$0xff]  }
  0x4c   :  { %542 = vmatpush2.bf16.msra.mxu0 %v1886_v38  ;;  %655 = vmatpush2.bf16.msra.mxu1 %v1887_v39  ;;  %v108_v38 = vpack.c.bf16 %v84_v32, %v82_v31  ;;  %v1948_v39 = vld [vmem:[#allocation7 + $0x30] ss:$8 sps:$4 sm:$0xff]   ;;  %v1998_v32 = vld [vmem:[#allocation7 + $0xb4] ss:$8 sps:$4 sm:$0xff]  }
  0x4d   :  { %543 = vmatprep.subr.bf16.mxu0 %v1888_v40  ;;  %656 = vmatprep.subr.bf16.mxu1 %v1890_v41  ;;  %v1951_v40 = vld [vmem:[#allocation7 + $0x130] ss:$8 sps:$4 sm:$0xff]   ;;  %v81_v41 = vld [vmem:[#allocation2 + $0x60] sm:$0xff] }
  0x50   :  { %544 = vmatpush2.bf16.msra.mxu0 %v1892_v42  ;;  %657 = vmatpush2.bf16.msra.mxu1 %v1893_v43  ;;  %v83_v42 = vld [vmem:[#allocation2 + $0x70] sm:$0xff]  ;;  %v1956_v43 = vld [vmem:[#allocation7 + $0x24] ss:$8 sps:$4 sm:$0xff]  }
  0x51   :  { %545 = vmatprep.subr.bf16.mxu0 %v1894_v44  ;;  %658 = vmatprep.subr.bf16.mxu1 %v1896_v45  ;;  %v1959_v44 = vld [vmem:[#allocation7 + $0x124] ss:$8 sps:$4 sm:$0xff]  }
  0x52   :  { %v86_v45 = vld [vmem:[#allocation2 + $0x88] sm:$0xff] }
  0x54   :  { %546 = vmatpush2.bf16.msra.mxu0 %v1898_v48  ;;  %659 = vmatpush2.bf16.msra.mxu1 %v1899_v49  ;;  %v1957_v48 = vld [vmem:[#allocation7 + $0x120] ss:$8 sps:$4 sm:$0xff]   ;;  %v1962_v49 = vld [vmem:[#allocation7 + $0x14] ss:$8 sps:$4 sm:$0xff]  }
  0x55   :  { %547 = vmatprep.subr.bf16.mxu0 %v1900_v51  ;;  %660 = vmatprep.subr.bf16.mxu1 %v1902_v52  ;;  %v107_v51 = vpack.c.bf16 %v83_v42, %v81_v41  ;;  %v1960_v52 = vld [vmem:[#allocation7 + $0x10] ss:$8 sps:$4 sm:$0xff]   ;;  %v2013_v41 = vld [vmem:[#allocation7 + $0x194] ss:$8 sps:$4 sm:$0xff]  }
  0x56   :  { %v2008_v42 = vld [vmem:[#allocation7 + $0x90] ss:$8 sps:$4 sm:$0xff]  }
  0x58   :  { %548 = vmatpush2.bf16.msra.mxu0 %v1904_v53  ;;  %661 = vmatpush2.bf16.msra.mxu1 %v1905_v54  ;;  %v1963_v53 = vld [vmem:[#allocation7 + $0x110] ss:$8 sps:$4 sm:$0xff]   ;;  %v110_v54 = vpack.c.bf16 %v88_v46, %v86_v45  ;;  %v2019_v45 = vld [vmem:[#allocation7 + $0x184] ss:$8 sps:$4 sm:$0xff]   ;;  %v2014_v46 = vld [vmem:[#allocation7 + $0x80] ss:$8 sps:$4 sm:$0xff]  }
  0x59   :  { %549 = vmatprep.subr.bf16.mxu0 %v1906_v55  ;;  %662 = vmatprep.subr.bf16.mxu1 %v1908_v56  ;;  %v1968_v55 = vld [vmem:[#allocation7 + $0x4] ss:$8 sps:$4 sm:$0xff]  }
  0x5a   :  { %v1971_v56 = vld [vmem:[#allocation7 + $0x104] ss:$8 sps:$4 sm:$0xff]  }
  0x5c   :  { %550 = vmatpush2.bf16.msra.mxu0 %v1910_v57  ;;  %663 = vmatpush2.bf16.msra.mxu1 %v1911_v58  ;;  %v85_v57 = vld [vmem:[#allocation2 + $0x80] sm:$0xff]  ;;  %v87_v58 = vld [vmem:[#allocation2 + $0x90] sm:$0xff] }
  0x5d   :  { %551 = vmatprep.subr.bf16.mxu0 %v1912_v59  ;;  %664 = vmatprep.subr.bf16.mxu1 %v1914_v60  ;;  %v90_v59 = vld [vmem:[#allocation2 + $0xa8] sm:$0xff]  ;;  %v92_v60 = vld [vmem:[#allocation2 + $0xb8] sm:$0xff] }
  0x60   :  { %552 = vmatpush2.bf16.msra.mxu0 %v1916_v61  ;;  %665 = vmatpush2.bf16.msra.mxu1 %v1917_v62  ;;  %v1966_v61 = vld [vmem:[#allocation7] ss:$8 sps:$4 sm:$0xff]  }
  0x61   :  { %553 = vmatprep.subr.bf16.mxu0 %v1918_v63  ;;  %666 = vmatprep.subr.bf16.mxu1 %v1920_v0  ;;  %v1969_v62 = vld [vmem:[#allocation7 + $0x100] ss:$8 sps:$4 sm:$0xff]   ;;  %v1974_v63 = vld [vmem:[#allocation7 + $0xf4] ss:$8 sps:$4 sm:$0xff]  }
  0x62   :  { %v1977_v0 = vld [vmem:[#allocation7 + $0x1f4] ss:$8 sps:$4 sm:$0xff]  }
  0x64   :  { %554 = vmatpush2.bf16.msra.mxu0 %v1922_v1  ;;  %667 = vmatpush2.bf16.msra.mxu1 %v1923_v2  ;;  %v109_v1 = vpack.c.bf16 %v87_v58, %v85_v57  ;;  %v112_v2 = vpack.c.bf16 %v92_v60, %v90_v59 }
  0x65   :  { %1305 = vmatprep.subr.bf16.mxu0 %v1926_v7  ;;  %1418 = vmatprep.subr.bf16.mxu1 %v1929_v8  ;;  %v89_v7 = vld [vmem:[#allocation2 + $0xa0] sm:$0xff]  ;;  %v91_v8 = vld [vmem:[#allocation2 + $0xb0] sm:$0xff] }
  0x67   :  { %556 = vmatmul.mubr.bf16.vlgmr.msra.gmra.mxu0 %v101_v9  ;;  %669 = vmatmul.mubr.bf16.vlgmr.msra.gmra.mxu1 %v101_v9  ;;  %v94_v9 = vld [vmem:[#allocation2 + $0xc8] sm:$0xff] }
  0x68   :  { %565 = vmatprep.mubr.bf16.mxu0 %v104_v10  ;;  %678 = vmatprep.mubr.bf16.mxu1 %v104_v10  ;;  %v96_v10 = vld [vmem:[#allocation2 + $0xd8] sm:$0xff] }
  0x69   :  { %1306 = vmatpush1.bf16.msra.mxu0 %v1924_v11  ;;  %1419 = vmatpush1.bf16.msra.mxu1 %v1927_v12  ;;  %v1978_v11 = vld [vmem:[#allocation7 + $0xe0] ss:$8 sps:$4 sm:$0xff]  }
  0x6a   :  { %1307 = vmatprep.subr.bf16.mxu0 %v1932_v15  ;;  %1420 = vmatprep.subr.bf16.mxu1 %v1935_v16  ;;  %v1981_v12 = vld [vmem:[#allocation7 + $0x1e0] ss:$8 sps:$4 sm:$0xff]   ;;  %v111_v15 = vpack.c.bf16 %v91_v8, %v89_v7  ;;  %v114_v16 = vpack.c.bf16 %v96_v10, %v94_v9 }
  0x6d   :  { %1308 = vmatpush1.bf16.msra.mxu0 %v1930_v19  ;;  %1421 = vmatpush1.bf16.msra.mxu1 %v1933_v20  ;;  %v1992_v19 = vld [vmem:[#allocation7 + $0xc4] ss:$8 sps:$4 sm:$0xff]  }
  0x6e   :  { %1309 = vmatprep.subr.bf16.mxu0 %v1938_v21  ;;  %1422 = vmatprep.subr.bf16.mxu1 %v1941_v22  ;;  %v1995_v20 = vld [vmem:[#allocation7 + $0x1c4] ss:$8 sps:$4 sm:$0xff]   ;;  %v95_v22 = vld [vmem:[#allocation2 + $0xd0] sm:$0xff] }
  0x6f   :  { %566 = vmatmul.mubr.bf16.gmra.mxu0 %v103_v23  ;;  %679 = vmatmul.mubr.bf16.gmra.mxu1 %v103_v23  ;;  %v93_v21 = vld [vmem:[#allocation2 + $0xc0] sm:$0xff]  ;;  %v98_v23 = vld [vmem:[#allocation2 + $0xe8] sm:$0xff] }
  0x70   :  { %575 = vmatprep.mubr.bf16.mxu0 %v106_v24  ;;  %688 = vmatprep.mubr.bf16.mxu1 %v106_v24  ;;  %v100_v24 = vld [vmem:[#allocation2 + $0xf8] sm:$0xff]  ;;  %v113_v27 = vpack.c.bf16 %v95_v22, %v93_v21 }
  0x71   :  { %1310 = vmatpush1.bf16.msra.mxu0 %v1936_v25  ;;  %1423 = vmatpush1.bf16.msra.mxu1 %v1939_v26  ;;  %v1990_v25 = vld [vmem:[#allocation7 + $0xc0] ss:$8 sps:$4 sm:$0xff]   ;;  %v116_v28 = vpack.c.bf16 %v100_v24, %v98_v23 }
  0x72   :  { %1311 = vmatprep.subr.bf16.mxu0 %v1944_v29  ;;  %1424 = vmatprep.subr.bf16.mxu1 %v1947_v30  ;;  %v1993_v26 = vld [vmem:[#allocation7 + $0x1c0] ss:$8 sps:$4 sm:$0xff]   ;;  %v99_v30 = vld [vmem:[#allocation2 + $0xf0] sm:$0xff] }
  0x73   :  { %v97_v29 = vld [vmem:[#allocation2 + $0xe0] sm:$0xff] }
  0x74   :  { %v115_v31 = vpack.c.bf16 %v99_v30, %v97_v29 }
  0x75   :  { %1312 = vmatpush1.bf16.msra.mxu0 %v1942_v33  ;;  %1425 = vmatpush1.bf16.msra.mxu1 %v1945_v34  ;;  %v2001_v33 = vld [vmem:[#allocation7 + $0x1b4] ss:$8 sps:$4 sm:$0xff]   ;;  %v1996_v34 = vld [vmem:[#allocation7 + $0xb0] ss:$8 sps:$4 sm:$0xff]  }
  0x76   :  { %1313 = vmatprep.subr.bf16.mxu0 %v1950_v35  ;;  %1426 = vmatprep.subr.bf16.mxu1 %v1953_v36  ;;  %v1999_v35 = vld [vmem:[#allocation7 + $0x1b0] ss:$8 sps:$4 sm:$0xff]   ;;  %v2004_v36 = vld [vmem:[#allocation7 + $0xa4] ss:$8 sps:$4 sm:$0xff]  }
  0x77   :  { %576 = vmatmul.mubr.bf16.gmra.mxu0 %v105_v37  ;;  %689 = vmatmul.mubr.bf16.gmra.mxu1 %v105_v37  ;;  %v2007_v37 = vld [vmem:[#allocation7 + $0x1a4] ss:$8 sps:$4 sm:$0xff]  }
  0x78   :  { %585 = vmatprep.mubr.bf16.mxu0 %v108_v38  ;;  %698 = vmatprep.mubr.bf16.mxu1 %v108_v38  ;;  %v2002_v38 = vld [vmem:[#allocation7 + $0xa0] ss:$8 sps:$4 sm:$0xff]  }
  0x79   :  { %1314 = vmatpush1.bf16.msra.mxu0 %v1948_v39  ;;  %1427 = vmatpush1.bf16.msra.mxu1 %v1951_v40  ;;  %v2005_v39 = vld [vmem:[#allocation7 + $0x1a0] ss:$8 sps:$4 sm:$0xff]   ;;  %v2010_v40 = vld [vmem:[#allocation7 + $0x94] ss:$8 sps:$4 sm:$0xff]  }
  0x7a   :  { %1315 = vmatprep.subr.bf16.mxu0 %v1956_v43  ;;  %1428 = vmatprep.subr.bf16.mxu1 %v1959_v44  ;;  %v2011_v43 = vld [vmem:[#allocation7 + $0x190] ss:$8 sps:$4 sm:$0xff]   ;;  %v2016_v44 = vld [vmem:[#allocation7 + $0x84] ss:$8 sps:$4 sm:$0xff]  }
  0x7d   :  { %1316 = vmatpush1.bf16.msra.mxu0 %v1954_v47  ;;  %1429 = vmatpush1.bf16.msra.mxu1 %v1957_v48  ;;  %v2017_v47 = vld [vmem:[#allocation7 + $0x180] ss:$8 sps:$4 sm:$0xff]   ;;  %v183_v48 = vlaneseq }
  0x7e   :  { %1317 = vmatprep.subr.bf16.mxu0 %v1962_v49  ;;  %1430 = vmatprep.subr.bf16.mxu1 %v1965_v50 }
  0x7f   :  { %586 = vmatmul.mubr.bf16.gmra.mxu0 %v107_v51  ;;  %699 = vmatmul.mubr.bf16.gmra.mxu1 %v107_v51  ;;  %v2170_v49 = vshrl.u32 %v183_v48, 7 }
  0x80   :  { %595 = vmatprep.mubr.bf16.mxu0 %v110_v54  ;;  %708 = vmatprep.mubr.bf16.mxu1 %v110_v54 }
  0x81   :  { %1318 = vmatpush1.bf16.msra.mxu0 %v1960_v52  ;;  %1431 = vmatpush1.bf16.msra.mxu1 %v1963_v53  ;;  %v185_v50 = vsub.s32 0, %v2170_v49  ;;  %v189_v51 = vsub.s32 1, %v2170_v49  ;;  %v181_v52 = vld [vmem:[%s2398_s2] sm:$0xf]  ;;  %v197_v53 = vsub.s32 3, %v2170_v49  ;;  %v193_v54 = vsub.s32 2, %v2170_v49 }
  0x82   :  { %1319 = vmatprep.subr.bf16.mxu0 %v1968_v55  ;;  %1432 = vmatprep.subr.bf16.mxu1 %v1971_v56 }
  0x83   :  { %v2181_v55 = vrot.slane %v181_v52, %v185_v50  ;;  %v2185_v56 = vrot.slane %v181_v52, %v189_v51  ;;  %v2187_v59 = vrot.slane %v181_v52, %v197_v53  ;;  %v2189_v60 = vrot.slane %v181_v52, %v193_v54 }
  0x85   :  { %1320 = vmatpush1.bf16.msra.mxu0 %v1966_v61  ;;  %1433 = vmatpush1.bf16.msra.mxu1 %v1969_v62 }
  0x86   :  { %1321 = vmatprep.subr.bf16.mxu0 %v1974_v63  ;;  %1434 = vmatprep.subr.bf16.mxu1 %v1977_v0 }
  0x87   :  { %596 = vmatmul.mubr.bf16.gmra.mxu0 %v109_v1  ;;  %709 = vmatmul.mubr.bf16.gmra.mxu1 %v109_v1 }
  0x88   :  { %605 = vmatprep.mubr.bf16.mxu0 %v112_v2  ;;  %718 = vmatprep.mubr.bf16.mxu1 %v112_v2 }
  0x89   :  { %1322 = vmatpush2.bf16.msra.mxu0 %v1972_v3  ;;  %1435 = vmatpush2.bf16.msra.mxu1 %v1975_v4 }
  0x8a   :  { %1323 = vmatprep.subr.bf16.mxu0 %v1980_v5  ;;  %1436 = vmatprep.subr.bf16.mxu1 %v1983_v6 }
  0x8d   :  { %1324 = vmatpush2.bf16.msra.mxu0 %v1978_v11  ;;  %1437 = vmatpush2.bf16.msra.mxu1 %v1981_v12 }
  0x8e   :  { %1325 = vmatprep.subr.bf16.mxu0 %v1986_v13  ;;  %1438 = vmatprep.subr.bf16.mxu1 %v1989_v14 }
  0x8f   :  { %606 = vmatmul.mubr.bf16.gmra.mxu0 %v111_v15  ;;  %719 = vmatmul.mubr.bf16.gmra.mxu1 %v111_v15 }
  0x90   :  { %615 = vmatprep.mubr.bf16.mxu0 %v114_v16  ;;  %728 = vmatprep.mubr.bf16.mxu1 %v114_v16 }
  0x91   :  { %1326 = vmatpush2.bf16.msra.mxu0 %v1984_v17  ;;  %1439 = vmatpush2.bf16.msra.mxu1 %v1987_v18 }
  0x92   :  { %1327 = vmatprep.subr.bf16.mxu0 %v1992_v19  ;;  %1440 = vmatprep.subr.bf16.mxu1 %v1995_v20 }
  0x95   :  { %1328 = vmatpush2.bf16.msra.mxu0 %v1990_v25  ;;  %1441 = vmatpush2.bf16.msra.mxu1 %v1993_v26 }
  0x96   :  { %1329 = vmatprep.subr.bf16.mxu0 %v1998_v32  ;;  %1442 = vmatprep.subr.bf16.mxu1 %v2001_v33 }
  0x97   :  { %616 = vmatmul.mubr.bf16.gmra.mxu0 %v113_v27  ;;  %729 = vmatmul.mubr.bf16.gmra.mxu1 %v113_v27 }
  0x98   :  { %625 = vmatprep.mubr.bf16.mxu0 %v116_v28  ;;  %738 = vmatprep.mubr.bf16.mxu1 %v116_v28 }
  0x99   :  { %1330 = vmatpush2.bf16.msra.mxu0 %v1996_v34  ;;  %1443 = vmatpush2.bf16.msra.mxu1 %v1999_v35 }
  0x9a   :  { %1331 = vmatprep.subr.bf16.mxu0 %v2004_v36  ;;  %1444 = vmatprep.subr.bf16.mxu1 %v2007_v37 }
  0x9d   :  { %1332 = vmatpush2.bf16.msra.mxu0 %v2002_v38  ;;  %1445 = vmatpush2.bf16.msra.mxu1 %v2005_v39 }
  0x9e   :  { %1333 = vmatprep.subr.bf16.mxu0 %v2010_v40  ;;  %1446 = vmatprep.subr.bf16.mxu1 %v2013_v41 }
  0x9f   :  { %626 = vmatmul.mubr.bf16.gmra.mxu0 %v115_v31  ;;  %739 = vmatmul.mubr.bf16.gmra.mxu1 %v115_v31 }
  0xa1   :  { %1334 = vmatpush2.bf16.msra.mxu0 %v2008_v42  ;;  %1447 = vmatpush2.bf16.msra.mxu1 %v2011_v43 }
  0xa2   :  { %1335 = vmatprep.subr.bf16.mxu0 %v2016_v44  ;;  %1448 = vmatprep.subr.bf16.mxu1 %v2019_v45 }
  0xa5   :  { %1336 = vmatpush2.bf16.msra.mxu0 %v2014_v46  ;;  %1449 = vmatpush2.bf16.msra.mxu1 %v2017_v47 }
 0x127   :  { %v557_v57 = vpop.f32.mrf.mxu0  ;;  %v670_v58 = vpop.f32.mrf.mxu1 }
 0x128   :  { %v558_v63 = vadd.f32 %v557_v57, %v2181_v55  ;;  %v671_v4 = vadd.f32 %v670_v58, %v2189_v60 }
 0x129   :  { %v559_v61 = vpop.f32.mrf.mxu0  ;;  %v672_v62 = vpop.f32.mrf.mxu1 }
 0x12a   :  { %v560_v0 = vadd.f32 %v559_v61, %v2185_v56  ;;  %v673_v1 = vadd.f32 %v672_v62, %v2187_v59  ;;  %v749_v9 = vmul.f32 0.2, %v558_v63  ;;  %v751_v18 = vmul.f32 0.2, %v671_v4 }
 0x12b   :  { %v561_v2 = vpop.f32.mrf.mxu0  ;;  %v674_v3 = vpop.f32.mrf.mxu1 }
 0x12c   :  { %v562_v5 = vadd.f32 %v561_v2, %v2181_v55  ;;  %v675_v6 = vadd.f32 %v674_v3, %v2189_v60  ;;  %v750_v10 = vmul.f32 0.2, %v560_v0  ;;  %v752_v13 = vmul.f32 0.2, %v673_v1 }
 0x12d   :  { %v563_v7 = vpop.f32.mrf.mxu0  ;;  %v676_v8 = vpop.f32.mrf.mxu1  ;;  %v813_v25 = vmax.f32 %v558_v63, %v749_v9  ;;  %v815_v35 = vmax.f32 %v671_v4, %v751_v18 }
 0x12e   :  { %v564_v11 = vadd.f32 %v563_v7, %v2185_v56  ;;  %v677_v12 = vadd.f32 %v676_v8, %v2187_v59  ;;  %v753_v14 = vmul.f32 0.2, %v562_v5  ;;  %v755_v15 = vmul.f32 0.2, %v675_v6 }
 0x12f   :  { %v567_v16 = vpop.f32.mrf.mxu0  ;;  %v680_v17 = vpop.f32.mrf.mxu1  ;;  %v814_v29 = vmax.f32 %v560_v0, %v750_v10  ;;  %v816_v30 = vmax.f32 %v673_v1, %v752_v13 }
 0x130   :  { %v754_v19 = vmul.f32 0.2, %v564_v11  ;;  %v756_v20 = vmul.f32 0.2, %v677_v12  ;;  %v817_v21 = vmax.f32 %v562_v5, %v753_v14  ;;  %v2200_v22 = vadd.f32 %v567_v16, %v2181_v55 }
 0x131   :  { %v569_v23 = vpop.f32.mrf.mxu0  ;;  %v682_v24 = vpop.f32.mrf.mxu1  ;;  %v819_v26 = vmax.f32 %v675_v6, %v755_v15  ;;  %v681_v36 = vadd.f32 %v680_v17, %v2189_v60 }
 0x132   :  { %v818_v27 = vmax.f32 %v564_v11, %v754_v19  ;;  %v820_v28 = vmax.f32 %v677_v12, %v756_v20  ;;  %v570_v31 = vadd.f32 %v569_v23, %v2185_v56  ;;  %v683_v32 = vadd.f32 %v682_v24, %v2187_v59 }
 0x133   :  { %v571_v33 = vpop.f32.mrf.mxu0  ;;  %v684_v34 = vpop.f32.mrf.mxu1  ;;  %v877_v39 = vpack.c.bf16 %v817_v21, %v813_v25  ;;  %v757_v40 = vmul.f32 0.2, %v2200_v22  ;;  %v879_v45 = vpack.c.bf16 %v819_v26, %v815_v35  ;;  %v759_v63 = vmul.f32 0.2, %v681_v36 }
 0x134   :  { %v572_v37 = vadd.f32 %v571_v33, %v2181_v55  ;;  %v685_v38 = vadd.f32 %v684_v34, %v2189_v60  ;;  %v878_v43 = vpack.c.bf16 %v818_v27, %v814_v29  ;;  %v880_v44 = vpack.c.bf16 %v820_v28, %v816_v30 }
 0x135   :  { %v573_v41 = vpop.f32.mrf.mxu0  ;;  %v686_v42 = vpop.f32.mrf.mxu1  ;;  %v758_v52 = vmul.f32 0.2, %v570_v31  ;;  %v760_v53 = vmul.f32 0.2, %v683_v32  ;;  %v821_v7 = vmax.f32 %v2200_v22, %v757_v40  ;;  %v823_v17 = vmax.f32 %v681_v36, %v759_v63 }
 0x136   :  { %v761_v46 = vmul.f32 0.2, %v572_v37  ;;  %v574_v47 = vadd.f32 %v573_v41, %v2185_v56  ;;  %v687_v48 = vadd.f32 %v686_v42, %v2187_v59  ;;  %v763_v54 = vmul.f32 0.2, %v685_v38  ;;  %1337 = vmatprep.mubr.bf16.mxu0 %v878_v43  ;;  %1450 = vmatprep.mubr.bf16.mxu1 %v880_v44 }
 0x137   :  { %v577_v57 = vpop.f32.mrf.mxu0  ;;  %v690_v58 = vpop.f32.mrf.mxu1  ;;  %1338 = vmatmul.mubr.bf16.vlgmr.msra.gmra.mxu0 %v877_v39  ;;  %1451 = vmatmul.mubr.bf16.vlgmr.msra.gmra.mxu1 %v879_v45  ;;  %v822_v8 = vmax.f32 %v570_v31, %v758_v52  ;;  %v824_v9 = vmax.f32 %v683_v32, %v760_v53 }
 0x138   :  { %v762_v61 = vmul.f32 0.2, %v574_v47  ;;  %v764_v62 = vmul.f32 0.2, %v687_v48  ;;  %v825_v0 = vmax.f32 %v572_v37, %v761_v46  ;;  %v827_v10 = vmax.f32 %v685_v38, %v763_v54 }
 0x139   :  { %v579_v1 = vpop.f32.mrf.mxu0  ;;  %v692_v2 = vpop.f32.mrf.mxu1  ;;  %v578_v13 = vadd.f32 %v577_v57, %v2181_v55  ;;  %v691_v14 = vadd.f32 %v690_v58, %v2189_v60 }
 0x13a   :  { %v826_v3 = vmax.f32 %v574_v47, %v762_v61  ;;  %v828_v4 = vmax.f32 %v687_v48, %v764_v62  ;;  %v580_v5 = vadd.f32 %v579_v1, %v2185_v56  ;;  %v693_v6 = vadd.f32 %v692_v2, %v2187_v59 }
 0x13b   :  { %v581_v11 = vpop.f32.mrf.mxu0  ;;  %v694_v12 = vpop.f32.mrf.mxu1  ;;  %v881_v25 = vpack.c.bf16 %v825_v0, %v821_v7  ;;  %v883_v31 = vpack.c.bf16 %v827_v10, %v823_v17  ;;  %v765_v32 = vmul.f32 0.2, %v578_v13  ;;  %v767_v33 = vmul.f32 0.2, %v691_v14 }
 0x13c   :  { %v582_v15 = vadd.f32 %v581_v11, %v2181_v55  ;;  %v695_v16 = vadd.f32 %v694_v12, %v2189_v60  ;;  %v882_v20 = vpack.c.bf16 %v826_v3, %v822_v8  ;;  %v884_v21 = vpack.c.bf16 %v828_v4, %v824_v9 }
 0x13d   :  { %v583_v18 = vpop.f32.mrf.mxu0  ;;  %v696_v19 = vpop.f32.mrf.mxu1  ;;  %v766_v23 = vmul.f32 0.2, %v580_v5  ;;  %v768_v22 = vmul.f32 0.2, %v693_v6  ;;  %v829_v52 = vmax.f32 %v578_v13, %v765_v32  ;;  %v831_v53 = vmax.f32 %v691_v14, %v767_v33 }
 0x13e   :  { %v769_v24 = vmul.f32 0.2, %v582_v15  ;;  %v771_v26 = vmul.f32 0.2, %v695_v16  ;;  %v584_v27 = vadd.f32 %v583_v18, %v2185_v56  ;;  %v697_v28 = vadd.f32 %v696_v19, %v2187_v59  ;;  %1347 = vmatprep.mubr.bf16.mxu0 %v882_v20  ;;  %1460 = vmatprep.mubr.bf16.mxu1 %v884_v21 }
 0x13f   :  { %v587_v29 = vpop.f32.mrf.mxu0  ;;  %v700_v30 = vpop.f32.mrf.mxu1  ;;  %1348 = vmatmul.mubr.bf16.gmra.mxu0 %v881_v25  ;;  %1461 = vmatmul.mubr.bf16.gmra.mxu1 %v883_v31  ;;  %v830_v39 = vmax.f32 %v580_v5, %v766_v23  ;;  %v832_v40 = vmax.f32 %v693_v6, %v768_v22 }
 0x140   :  { %v2220_v34 = vadd.f32 %v587_v29, %v2181_v55  ;;  %v770_v35 = vmul.f32 0.2, %v584_v27  ;;  %v772_v36 = vmul.f32 0.2, %v697_v28  ;;  %v833_v41 = vmax.f32 %v582_v15, %v769_v24 }
 0x141   :  { %v589_v37 = vpop.f32.mrf.mxu0  ;;  %v702_v38 = vpop.f32.mrf.mxu1  ;;  %v835_v43 = vmax.f32 %v695_v16, %v771_v26  ;;  %v701_v57 = vadd.f32 %v700_v30, %v2189_v60 }
 0x142   :  { %v590_v42 = vadd.f32 %v589_v37, %v2185_v56  ;;  %v834_v44 = vmax.f32 %v584_v27, %v770_v35  ;;  %v836_v45 = vmax.f32 %v697_v28, %v772_v36  ;;  %v703_v46 = vadd.f32 %v702_v38, %v2187_v59 }
 0x143   :  { %v591_v47 = vpop.f32.mrf.mxu0  ;;  %v704_v48 = vpop.f32.mrf.mxu1  ;;  %v773_v54 = vmul.f32 0.2, %v2220_v34  ;;  %v885_v5 = vpack.c.bf16 %v833_v41, %v829_v52  ;;  %v887_v11 = vpack.c.bf16 %v835_v43, %v831_v53  ;;  %v775_v12 = vmul.f32 0.2, %v701_v57 }
 0x144   :  { %v592_v58 = vadd.f32 %v591_v47, %v2181_v55  ;;  %v705_v61 = vadd.f32 %v704_v48, %v2189_v60  ;;  %v886_v0 = vpack.c.bf16 %v834_v44, %v830_v39  ;;  %v888_v1 = vpack.c.bf16 %v836_v45, %v832_v40 }
 0x145   :  { %v593_v62 = vpop.f32.mrf.mxu0  ;;  %v706_v63 = vpop.f32.mrf.mxu1  ;;  %v774_v2 = vmul.f32 0.2, %v590_v42  ;;  %v776_v6 = vmul.f32 0.2, %v703_v46  ;;  %v837_v28 = vmax.f32 %v2220_v34, %v773_v54  ;;  %v839_v29 = vmax.f32 %v701_v57, %v775_v12 }
 0x146   :  { %v594_v3 = vadd.f32 %v593_v62, %v2185_v56  ;;  %v707_v4 = vadd.f32 %v706_v63, %v2187_v59  ;;  %v777_v7 = vmul.f32 0.2, %v592_v58  ;;  %v779_v8 = vmul.f32 0.2, %v705_v61  ;;  %1357 = vmatprep.mubr.bf16.mxu0 %v886_v0  ;;  %1470 = vmatprep.mubr.bf16.mxu1 %v888_v1 }
 0x147   :  { %v597_v9 = vpop.f32.mrf.mxu0  ;;  %v710_v10 = vpop.f32.mrf.mxu1  ;;  %1358 = vmatmul.mubr.bf16.gmra.mxu0 %v885_v5  ;;  %1471 = vmatmul.mubr.bf16.gmra.mxu1 %v887_v11  ;;  %v838_v18 = vmax.f32 %v590_v42, %v774_v2  ;;  %v840_v23 = vmax.f32 %v703_v46, %v776_v6 }
 0x148   :  { %v778_v13 = vmul.f32 0.2, %v594_v3  ;;  %v780_v14 = vmul.f32 0.2, %v707_v4  ;;  %v2231_v15 = vadd.f32 %v597_v9, %v2181_v55  ;;  %v841_v19 = vmax.f32 %v592_v58, %v777_v7 }
 0x149   :  { %v599_v16 = vpop.f32.mrf.mxu0  ;;  %v712_v17 = vpop.f32.mrf.mxu1  ;;  %v843_v22 = vmax.f32 %v705_v61, %v779_v8  ;;  %v711_v33 = vadd.f32 %v710_v10, %v2189_v60 }
 0x14a   :  { %v842_v20 = vmax.f32 %v594_v3, %v778_v13  ;;  %v844_v21 = vmax.f32 %v707_v4, %v780_v14  ;;  %v600_v24 = vadd.f32 %v599_v16, %v2185_v56  ;;  %v713_v25 = vadd.f32 %v712_v17, %v2187_v59 }
 0x14b   :  { %v601_v26 = vpop.f32.mrf.mxu0  ;;  %v714_v27 = vpop.f32.mrf.mxu1  ;;  %v781_v32 = vmul.f32 0.2, %v2231_v15  ;;  %v889_v42 = vpack.c.bf16 %v841_v19, %v837_v28  ;;  %v891_v47 = vpack.c.bf16 %v843_v22, %v839_v29  ;;  %v783_v53 = vmul.f32 0.2, %v711_v33 }
 0x14c   :  { %v602_v30 = vadd.f32 %v601_v26, %v2181_v55  ;;  %v715_v31 = vadd.f32 %v714_v27, %v2189_v60  ;;  %v890_v37 = vpack.c.bf16 %v842_v20, %v838_v18  ;;  %v892_v38 = vpack.c.bf16 %v844_v21, %v840_v23 }
 0x14d   :  { %v603_v35 = vpop.f32.mrf.mxu0  ;;  %v716_v36 = vpop.f32.mrf.mxu1  ;;  %v782_v34 = vmul.f32 0.2, %v600_v24  ;;  %v784_v43 = vmul.f32 0.2, %v713_v25  ;;  %v845_v1 = vmax.f32 %v2231_v15, %v781_v32  ;;  %v847_v11 = vmax.f32 %v711_v33, %v783_v53 }
 0x14e   :  { %v785_v39 = vmul.f32 0.2, %v602_v30  ;;  %v604_v40 = vadd.f32 %v603_v35, %v2185_v56  ;;  %v717_v41 = vadd.f32 %v716_v36, %v2187_v59  ;;  %v787_v44 = vmul.f32 0.2, %v715_v31  ;;  %1367 = vmatprep.mubr.bf16.mxu0 %v890_v37  ;;  %1480 = vmatprep.mubr.bf16.mxu1 %v892_v38 }
 0x14f   :  { %v607_v45 = vpop.f32.mrf.mxu0  ;;  %v720_v46 = vpop.f32.mrf.mxu1  ;;  %1368 = vmatmul.mubr.bf16.gmra.mxu0 %v889_v42  ;;  %1481 = vmatmul.mubr.bf16.gmra.mxu1 %v891_v47  ;;  %v846_v2 = vmax.f32 %v600_v24, %v782_v34  ;;  %v848_v3 = vmax.f32 %v713_v25, %v784_v43 }
 0x150   :  { %v786_v48 = vmul.f32 0.2, %v604_v40  ;;  %v788_v52 = vmul.f32 0.2, %v717_v41  ;;  %v849_v54 = vmax.f32 %v602_v30, %v785_v39  ;;  %v851_v4 = vmax.f32 %v715_v31, %v787_v44 }
 0x151   :  { %v609_v57 = vpop.f32.mrf.mxu0  ;;  %v722_v58 = vpop.f32.mrf.mxu1  ;;  %v608_v7 = vadd.f32 %v607_v45, %v2181_v55  ;;  %v721_v8 = vadd.f32 %v720_v46, %v2189_v60 }
 0x152   :  { %v850_v61 = vmax.f32 %v604_v40, %v786_v48  ;;  %v852_v62 = vmax.f32 %v717_v41, %v788_v52  ;;  %v610_v63 = vadd.f32 %v609_v57, %v2185_v56  ;;  %v723_v0 = vadd.f32 %v722_v58, %v2187_v59 }
 0x153   :  { %v611_v5 = vpop.f32.mrf.mxu0  ;;  %v724_v6 = vpop.f32.mrf.mxu1  ;;  %v893_v19 = vpack.c.bf16 %v849_v54, %v845_v1  ;;  %v895_v25 = vpack.c.bf16 %v851_v4, %v847_v11  ;;  %v789_v26 = vmul.f32 0.2, %v608_v7  ;;  %v791_v27 = vmul.f32 0.2, %v721_v8 }
 0x154   :  { %v612_v9 = vadd.f32 %v611_v5, %v2181_v55  ;;  %v725_v10 = vadd.f32 %v724_v6, %v2189_v60  ;;  %v894_v14 = vpack.c.bf16 %v850_v61, %v846_v2  ;;  %v896_v16 = vpack.c.bf16 %v852_v62, %v848_v3 }
 0x155   :  { %v613_v12 = vpop.f32.mrf.mxu0  ;;  %v726_v13 = vpop.f32.mrf.mxu1  ;;  %v790_v17 = vmul.f32 0.2, %v610_v63  ;;  %v792_v15 = vmul.f32 0.2, %v723_v0  ;;  %v853_v44 = vmax.f32 %v608_v7, %v789_v26  ;;  %v855_v45 = vmax.f32 %v721_v8, %v791_v27 }
 0x156   :  { %v793_v18 = vmul.f32 0.2, %v612_v9  ;;  %v795_v20 = vmul.f32 0.2, %v725_v10  ;;  %v614_v21 = vadd.f32 %v613_v12, %v2185_v56  ;;  %v727_v23 = vadd.f32 %v726_v13, %v2187_v59  ;;  %1377 = vmatprep.mubr.bf16.mxu0 %v894_v14  ;;  %1490 = vmatprep.mubr.bf16.mxu1 %v896_v16 }
 0x157   :  { %v617_v22 = vpop.f32.mrf.mxu0  ;;  %v730_v24 = vpop.f32.mrf.mxu1  ;;  %1378 = vmatmul.mubr.bf16.gmra.mxu0 %v893_v19  ;;  %1491 = vmatmul.mubr.bf16.gmra.mxu1 %v895_v25  ;;  %v854_v35 = vmax.f32 %v610_v63, %v790_v17  ;;  %v856_v36 = vmax.f32 %v723_v0, %v792_v15 }
 0x158   :  { %v2252_v28 = vadd.f32 %v617_v22, %v2181_v55  ;;  %v2255_v29 = vadd.f32 %v730_v24, %v2189_v60  ;;  %v794_v30 = vmul.f32 0.2, %v614_v21  ;;  %v796_v31 = vmul.f32 0.2, %v727_v23 }
 0x159   :  { %v619_v32 = vpop.f32.mrf.mxu0  ;;  %v732_v33 = vpop.f32.mrf.mxu1  ;;  %v857_v37 = vmax.f32 %v612_v9, %v793_v18  ;;  %v859_v39 = vmax.f32 %v725_v10, %v795_v20 }
 0x15a   :  { %v620_v38 = vadd.f32 %v619_v32, %v2185_v56  ;;  %v858_v40 = vmax.f32 %v614_v21, %v794_v30  ;;  %v860_v41 = vmax.f32 %v727_v23, %v796_v31  ;;  %v733_v42 = vadd.f32 %v732_v33, %v2187_v59 }
 0x15b   :  { %v621_v34 = vpop.f32.mrf.mxu0  ;;  %v734_v43 = vpop.f32.mrf.mxu1  ;;  %v797_v46 = vmul.f32 0.2, %v2252_v28  ;;  %v799_v47 = vmul.f32 0.2, %v2255_v29  ;;  %v897_v0 = vpack.c.bf16 %v857_v37, %v853_v44  ;;  %v899_v6 = vpack.c.bf16 %v859_v39, %v855_v45 }
 0x15c   :  { %v622_v48 = vadd.f32 %v621_v34, %v2181_v55  ;;  %v735_v52 = vadd.f32 %v734_v43, %v2189_v60  ;;  %v898_v57 = vpack.c.bf16 %v858_v40, %v854_v35  ;;  %v900_v58 = vpack.c.bf16 %v860_v41, %v856_v36 }
 0x15d   :  { %v623_v53 = vpop.f32.mrf.mxu0  ;;  %v736_v54 = vpop.f32.mrf.mxu1  ;;  %v798_v61 = vmul.f32 0.2, %v620_v38  ;;  %v800_v1 = vmul.f32 0.2, %v733_v42  ;;  %v861_v9 = vmax.f32 %v2252_v28, %v797_v46  ;;  %v863_v13 = vmax.f32 %v2255_v29, %v799_v47 }
 0x15e   :  { %v624_v62 = vadd.f32 %v623_v53, %v2185_v56  ;;  %v737_v63 = vadd.f32 %v736_v54, %v2187_v59  ;;  %v801_v2 = vmul.f32 0.2, %v622_v48  ;;  %v803_v3 = vmul.f32 0.2, %v735_v52  ;;  %1387 = vmatprep.mubr.bf16.mxu0 %v898_v57  ;;  %1500 = vmatprep.mubr.bf16.mxu1 %v900_v58  ;;  %v973_v54 = vld [vmem:[%s2400_s4] sm:$0x3] }
 0x15f   :  { %v627_v4 = vpop.f32.mrf.mxu0  ;;  %v740_v5 = vpop.f32.mrf.mxu1  ;;  %1388 = vmatmul.mubr.bf16.gmra.mxu0 %v897_v0  ;;  %1501 = vmatmul.mubr.bf16.gmra.mxu1 %v899_v6  ;;  %v862_v14 = vmax.f32 %v620_v38, %v798_v61  ;;  %v864_v15 = vmax.f32 %v733_v42, %v800_v1  ;;  %v2280_v57 = vrot.slane %v973_v54, %v185_v50 }
 0x160   :  { %v802_v7 = vmul.f32 0.2, %v624_v62  ;;  %v804_v8 = vmul.f32 0.2, %v737_v63  ;;  %v865_v10 = vmax.f32 %v622_v48, %v801_v2  ;;  %v867_v18 = vmax.f32 %v735_v52, %v803_v3  ;;  %v2290_v2 = vld [vmem:[%s2401_s5] sm:$0xff] }
 0x161   :  { %v629_v11 = vpop.f32.mrf.mxu0  ;;  %v742_v12 = vpop.f32.mrf.mxu1  ;;  %v628_v22 = vadd.f32 %v627_v4, %v2181_v55  ;;  %v741_v24 = vadd.f32 %v740_v5, %v2189_v60  ;;  %v2284_v58 = vrot.slane %v973_v54, %v189_v51  ;;  %v1817_v50 = vcombine.high %v2290_v2, %v2290_v2 }
 0x162   :  { %v866_v16 = vmax.f32 %v624_v62, %v802_v7  ;;  %v868_v17 = vmax.f32 %v737_v63, %v804_v8  ;;  %v630_v19 = vadd.f32 %v629_v11, %v2185_v56  ;;  %v743_v20 = vadd.f32 %v742_v12, %v2187_v59 }
 0x163   :  { %v631_v21 = vpop.f32.mrf.mxu0  ;;  %v744_v23 = vpop.f32.mrf.mxu1  ;;  %v901_v32 = vpack.c.bf16 %v865_v10, %v861_v9  ;;  %v903_v39 = vpack.c.bf16 %v867_v18, %v863_v13  ;;  %v805_v40 = vmul.f32 0.2, %v628_v22  ;;  %v1612_v18 = vld [vmem:[%s2402_s6] sm:$0xff]  ;;  %s2120_s6 = smov [#allocation8]  }
 0x164   :  { %v632_v25 = vadd.f32 %v631_v21, %v2181_v55  ;;  %v745_v26 = vadd.f32 %v744_v23, %v2189_v60  ;;  %v806_v27 = vmul.f32 0.2, %v630_v19  ;;  %v902_v30 = vpack.c.bf16 %v866_v16, %v862_v14  ;;  %s1678_s22 = sshll.u32 %s2120_s6, 4  ;;  %s1679_s22 = int_to_ptr.vmem [resolvable:$true] %s1678_s22 }
 0x165   :  { %v633_v28 = vpop.f32.mrf.mxu0  ;;  %v746_v29 = vpop.f32.mrf.mxu1  ;;  %v904_v31 = vpack.c.bf16 %v868_v17, %v864_v15  ;;  %v808_v33 = vmul.f32 0.2, %v743_v20  ;;  %v807_v60 = vmul.f32 0.2, %v741_v24  ;;  %v869_v47 = vmax.f32 %v628_v22, %v805_v40  ;;  %s2086_s23 = scalar_lea.vmem %s1679_s22, 128  ;;  %p2091_p2 = scmp.lt.s32.totalorder %s1679_s22, %s1679_s22 }
 0x166   :  { %v809_v35 = vmul.f32 0.2, %v632_v25  ;;  %v634_v36 = vadd.f32 %v633_v28, %v2185_v56  ;;  %v747_v37 = vadd.f32 %v746_v29, %v2187_v59  ;;  %v811_v38 = vmul.f32 0.2, %v745_v26  ;;  %1397 = vmatprep.mubr.bf16.mxu0 %v902_v30  ;;  %p2087_p1 = scmp.ne.s32.totalorder %s1679_s22, %s2086_s23  ;;  %p2092_p3 = scmp.lt.s32.totalorder %s2086_s23, %s2086_s23 }
 0x167   :  { %1510 = vmatprep.mubr.bf16.mxu1 %v904_v31  ;;  %1398 = vmatmul.mubr.bf16.gmra.mxu0 %v901_v32  ;;  %v870_v42 = vmax.f32 %v630_v19, %v806_v27  ;;  %v872_v34 = vmax.f32 %v743_v20, %v808_v33  ;;  %v871_v59 = vmax.f32 %v741_v24, %v807_v60 }
 0x168   :  { %v810_v55 = vmul.f32 0.2, %v634_v36  ;;  %v812_v41 = vmul.f32 0.2, %v747_v37  ;;  %1511 = vmatmul.mubr.bf16.gmra.mxu1 %v903_v39  ;;  %v873_v43 = vmax.f32 %v632_v25, %v809_v35  ;;  %v875_v46 = vmax.f32 %v745_v26, %v811_v38  ;;  %p2093_p4 = por %p2092_p3, %p2091_p2 }
 0x169   :  { %v2119_v26 = vmov 0  }
 0x16a   :  { %v874_v44 = vmax.f32 %v634_v36, %v810_v55  ;;  %v876_v45 = vmax.f32 %v747_v37, %v812_v41  ;;  %v905_v52 = vpack.c.bf16 %v873_v43, %v869_v47  ;;  %v907_v53 = vpack.c.bf16 %v875_v46, %v871_v59  ;;  %1827 = vset.pattern.permute.xlu0 %v2119_v26  ;;  %p2094_p5 = pnand %p2093_p4, %p2087_p1 }
 0x16b   :  { %1615 = vperm.xlu0 %1827, %v1612_v18  }
 0x16c   :  { %v906_v56 = vpack.c.bf16 %v874_v44, %v870_v42  ;;  %v908_v48 = vpack.c.bf16 %v876_v45, %v872_v34 }
 0x16e   :  { %1407 = vmatprep.mubr.bf16.mxu0 %v906_v56  ;;  %1520 = vmatprep.mubr.bf16.mxu1 %v908_v48 }
 0x16f   :  { %1408 = vmatmul.mubr.bf16.gmra.mxu0 %v905_v52 }
 0x170   :  { %1521 = vmatmul.mubr.bf16.gmra.mxu1 %v907_v53  ;;  %1657 = vmatprep.mubr.bf16.mxu0 %v1817_v50 }
 0x1f7   :  { %v1339_v61 = vpop.f32.mrf.mxu0  ;;  %v1452_v62 = vpop.f32.mrf.mxu1 }
 0x1f8   :  { %v1340_v63 = vadd.f32 %v1339_v61, %v2280_v57 }
 0x1f9   :  { %v1341_v0 = vpop.f32.mrf.mxu0  ;;  %v1454_v1 = vpop.f32.mrf.mxu1 }
 0x1fa   :  { %v1453_v3 = vadd.f32 %v1452_v62, %v1340_v63  ;;  %v1342_v4 = vadd.f32 %v1341_v0, %v2284_v58 }
 0x1fb   :  { %v1343_v49 = vpop.f32.mrf.mxu0  ;;  %v1456_v51 = vpop.f32.mrf.mxu1 }
 0x1fc   :  { %v1455_v5 = vadd.f32 %v1454_v1, %v1342_v4  ;;  %v1344_v6 = vadd.f32 %v1343_v49, %v2280_v57  ;;  %v1531_v7 = vmul.f32 0.2, %v1453_v3 }
 0x1fd   :  { %v1345_v8 = vpop.f32.mrf.mxu0  ;;  %v1458_v9 = vpop.f32.mrf.mxu1 }
 0x1fe   :  { %v1457_v10 = vadd.f32 %v1456_v51, %v1344_v6  ;;  %v1346_v11 = vadd.f32 %v1345_v8, %v2284_v58  ;;  %v1532_v13 = vmul.f32 0.2, %v1455_v5  ;;  %v1563_v19 = vmax.f32 %v1453_v3, %v1531_v7 }
 0x1ff   :  { %v1349_v12 = vpop.f32.mrf.mxu0  ;;  %v1462_v15 = vpop.f32.mrf.mxu1 }
 0x200   :  { %v1533_v14 = vmul.f32 0.2, %v1457_v10  ;;  %v1459_v16 = vadd.f32 %v1458_v9, %v1346_v11  ;;  %v1350_v17 = vadd.f32 %v1349_v12, %v2280_v57  ;;  %v1564_v28 = vmax.f32 %v1455_v5, %v1532_v13 }
 0x201   :  { %v1351_v20 = vpop.f32.mrf.mxu0  ;;  %v1464_v25 = vpop.f32.mrf.mxu1 }
 0x202   :  { %v1565_v21 = vmax.f32 %v1457_v10, %v1533_v14  ;;  %v1534_v23 = vmul.f32 0.2, %v1459_v16  ;;  %v1463_v22 = vadd.f32 %v1462_v15, %v1350_v17  ;;  %v1352_v24 = vadd.f32 %v1351_v20, %v2284_v58 }
 0x203   :  { %v1353_v27 = vpop.f32.mrf.mxu0  ;;  %v1466_v32 = vpop.f32.mrf.mxu1 }
 0x204   :  { %v2302_v29 = vpack.c.bf16 %v1565_v21, %v1563_v19  ;;  %v1566_v30 = vmax.f32 %v1459_v16, %v1534_v23  ;;  %v1465_v31 = vadd.f32 %v1464_v25, %v1352_v24  ;;  %v1354_v33 = vadd.f32 %v1353_v27, %v2280_v57 }
 0x205   :  { %v1355_v35 = vpop.f32.mrf.mxu0  ;;  %v1468_v37 = vpop.f32.mrf.mxu1  ;;  %v1535_v39 = vmul.f32 0.2, %v1463_v22 }
 0x206   :  { %v1356_v36 = vadd.f32 %v1355_v35, %v2284_v58  ;;  %v2306_v38 = vpack.c.bf16 %v1566_v30, %v1564_v28  ;;  %v1467_v40 = vadd.f32 %v1466_v32, %v1354_v33  ;;  %v1536_v34 = vmul.f32 0.2, %v1465_v31 }
 0x207   :  { %v1359_v55 = vpop.f32.mrf.mxu0  ;;  %v1472_v42 = vpop.f32.mrf.mxu1  ;;  %v1567_v48 = vmax.f32 %v1463_v22, %v1535_v39 }
 0x208   :  { %v1469_v41 = vadd.f32 %v1468_v37, %v1356_v36  ;;  %v1360_v60 = vadd.f32 %v1359_v55, %v2280_v57  ;;  %v1537_v43 = vmul.f32 0.2, %v1467_v40  ;;  %v1568_v63 = vmax.f32 %v1465_v31, %v1536_v34 }
 0x209   :  { %v1361_v44 = vpop.f32.mrf.mxu0  ;;  %v1474_v56 = vpop.f32.mrf.mxu1 }
 0x20a   :  { %v1538_v45 = vmul.f32 0.2, %v1469_v41  ;;  %v1473_v46 = vadd.f32 %v1472_v42, %v1360_v60  ;;  %v1362_v47 = vadd.f32 %v1361_v44, %v2284_v58  ;;  %v1569_v59 = vmax.f32 %v1467_v40, %v1537_v43 }
 0x20b   :  { %v1363_v52 = vpop.f32.mrf.mxu0  ;;  %v1476_v62 = vpop.f32.mrf.mxu1 }
 0x20c   :  { %v1570_v53 = vmax.f32 %v1469_v41, %v1538_v45  ;;  %v1475_v54 = vadd.f32 %v1474_v56, %v1362_v47  ;;  %v1364_v61 = vadd.f32 %v1363_v52, %v2280_v57  ;;  %v2311_v0 = vpack.c.bf16 %v1569_v59, %v1567_v48 }
 0x20d   :  { %v1365_v1 = vpop.f32.mrf.mxu0  ;;  %v1539_v3 = vmul.f32 0.2, %v1473_v46  ;;  %v1478_v49 = vpop.f32.mrf.mxu1 }
 0x20e   :  { %v1477_v4 = vadd.f32 %v1476_v62, %v1364_v61  ;;  %v1366_v50 = vadd.f32 %v1365_v1, %v2284_v58  ;;  %v2314_v5 = vpack.c.bf16 %v1570_v53, %v1568_v63  ;;  %v1540_v6 = vmul.f32 0.2, %v1475_v54 }
 0x20f   :  { %v1369_v51 = vpop.f32.mrf.mxu0  ;;  %v1482_v10 = vpop.f32.mrf.mxu1  ;;  %v1571_v12 = vmax.f32 %v1473_v46, %v1539_v3 }
 0x210   :  { %v1541_v7 = vmul.f32 0.2, %v1477_v4  ;;  %v1479_v8 = vadd.f32 %v1478_v49, %v1366_v50  ;;  %v1370_v9 = vadd.f32 %v1369_v51, %v2280_v57  ;;  %v1572_v18 = vmax.f32 %v1475_v54, %v1540_v6 }
 0x211   :  { %v2317_v11 = vpop.f32.mrf.mxu0  ;;  %v2319_v17 = vpop.f32.mrf.mxu1 }
 0x212   :  { %v1573_v13 = vmax.f32 %v1477_v4, %v1541_v7  ;;  %v1542_v14 = vmul.f32 0.2, %v1479_v8  ;;  %v1483_v16 = vadd.f32 %v1482_v10, %v1370_v9 }
 0x213   :  { %v1373_v15 = vpop.f32.mrf.mxu0  ;;  %v1486_v21 = vpop.f32.mrf.mxu1 }
 0x214   :  { %v2321_v19 = vpack.c.bf16 %v1573_v13, %v1571_v12  ;;  %v1574_v20 = vmax.f32 %v1479_v8, %v1542_v14  ;;  %v1374_v23 = vadd.f32 %v1373_v15, %v2280_v57  ;;  %v1543_v26 = vmul.f32 0.2, %v1483_v16 }
 0x215   :  { %v2324_v22 = vpop.f32.mrf.mxu0  ;;  %v2326_v24 = vpop.f32.mrf.mxu1 }
 0x216   :  { %v2328_v25 = vpack.c.bf16 %v1574_v20, %v1572_v18  ;;  %v1487_v27 = vadd.f32 %v1486_v21, %v1374_v23  ;;  %v1575_v35 = vmax.f32 %v1483_v16, %v1543_v26 }
 0x217   :  { %v2330_v28 = vpop.f32.mrf.mxu0  ;;  %v2332_v30 = vpop.f32.mrf.mxu1 }
 0x218   :  { %v1545_v31 = vmul.f32 0.2, %v1487_v27 }
 0x219   :  { %v2334_v32 = vpop.f32.mrf.mxu0  ;;  %v2336_v33 = vpop.f32.mrf.mxu1 }
 0x21a   :  { %v1577_v36 = vmax.f32 %v1487_v27, %v1545_v31 }
 0x21b   :  { %v2338_v37 = vpop.f32.mrf.mxu0  ;;  %v2340_v39 = vpop.f32.mrf.mxu1 }
 0x21c   :  { %v2342_v40 = vpack.c.bf16 %v1577_v36, %v1575_v35 }
 0x21d   :  { %v1385_v55 = vpop.f32.mrf.mxu0  ;;  %v2344_v41 = vpop.f32.mrf.mxu1 }
 0x21f   :  { %v2346_v60 = vpop.f32.mrf.mxu0  ;;  %v2348_v42 = vpop.f32.mrf.mxu1 }
 0x221   :  { %v1391_v34 = vpop.f32.mrf.mxu0  ;;  %v1504_v43 = vpop.f32.mrf.mxu1 }
 0x223   :  { %v1393_v44 = vpop.f32.mrf.mxu0  ;;  %v2350_v45 = vpop.f32.mrf.mxu1 }
 0x225   :  { %v1395_v46 = vpop.f32.mrf.mxu0  ;;  %v1508_v47 = vpop.f32.mrf.mxu1 }
 0x226   :  { %v1396_v23 = vadd.f32 %v1395_v46, %v2284_v58 }
 0x227   :  { %v1399_v56 = vpop.f32.mrf.mxu0 }
 0x228   :  { %v1512_v48 = vpop.f32.mrf.mxu1  ;;  %v1400_v35 = vadd.f32 %v1399_v56, %v2280_v57 }
 0x229   :  { %v1401_v59 = vpop.f32.mrf.mxu0 }
 0x22a   :  { %v1514_v52 = vpop.f32.mrf.mxu1  ;;  %v1402_v49 = vadd.f32 %v1401_v59, %v2284_v58 }
 0x22b   :  { %v1403_v53 = vpop.f32.mrf.mxu0 }
 0x22c   :  { %v1516_v54 = vpop.f32.mrf.mxu1  ;;  %v1515_v16 = vadd.f32 %v1514_v52, %v1402_v49  ;;  %v1404_v18 = vadd.f32 %v1403_v53, %v2280_v57  ;;  %v1513_v49 = vadd.f32 %v1512_v48, %v1400_v35  ;;  %v1382_v48 = vadd.f32 %v2334_v32, %v2284_v58 }
 0x22d   :  { %v1405_v61 = vpop.f32.mrf.mxu0  ;;  %v1376_v32 = vadd.f32 %v2324_v22, %v2284_v58 }
 0x22e   :  { %v1518_v62 = vpop.f32.mrf.mxu1  ;;  %v1406_v1 = vadd.f32 %v1405_v61, %v2284_v58  ;;  %v1392_v61 = vadd.f32 %v1391_v34, %v2284_v58  ;;  %v1517_v52 = vadd.f32 %v1516_v54, %v1404_v18  ;;  %v1555_v54 = vmul.f32 0.2, %v1513_v49 }
 0x22f   :  { %v1409_v63 = vpop.f32.mrf.mxu0  ;;  %v1495_v18 = vadd.f32 %v2336_v33, %v1382_v48  ;;  %v1489_v35 = vadd.f32 %v2326_v24, %v1376_v32 }
 0x230   :  { %v1522_v3 = vpop.f32.mrf.mxu1  ;;  %v1410_v4 = vadd.f32 %v1409_v63, %v2280_v57  ;;  %v1519_v8 = vadd.f32 %v1518_v62, %v1406_v1  ;;  %v1556_v62 = vmul.f32 0.2, %v1515_v16  ;;  %v1505_v46 = vadd.f32 %v1504_v43, %v1392_v61 }
 0x231   :  { %v1411_v50 = vpop.f32.mrf.mxu0  ;;  %v1557_v56 = vmul.f32 0.2, %v1517_v52  ;;  %v1548_v33 = vmul.f32 0.2, %v1495_v18 }
 0x232   :  { %v1412_v51 = vadd.f32 %v1411_v50, %v2284_v58  ;;  %v1524_v6 = vpop.f32.mrf.mxu1  ;;  %v1523_v12 = vadd.f32 %v1522_v3, %v1410_v4  ;;  %v1558_v26 = vmul.f32 0.2, %v1519_v8  ;;  %v1509_v3 = vadd.f32 %v1508_v47, %v1396_v23 }
 0x233   :  { %v1413_v7 = vpop.f32.mrf.mxu0  ;;  %v1390_v47 = vadd.f32 %v2346_v60, %v2280_v57  ;;  %v1552_v43 = vmul.f32 0.2, %v1505_v46  ;;  %v1384_v60 = vadd.f32 %v2338_v37, %v2280_v57 }
 0x234   :  { %v1525_v9 = vadd.f32 %v1524_v6, %v1412_v51  ;;  %v1526_v10 = vpop.f32.mrf.mxu1  ;;  %v1414_v13 = vadd.f32 %v1413_v7, %v2280_v57  ;;  %v1559_v36 = vmul.f32 0.2, %v1523_v12  ;;  %v1590_v4 = vmax.f32 %v1519_v8, %v1558_v26 }
 0x235   :  { %v1415_v14 = vpop.f32.mrf.mxu0  ;;  %v1588_v6 = vmax.f32 %v1515_v16, %v1556_v62  ;;  %v1554_v34 = vmul.f32 0.2, %v1509_v3  ;;  %v1587_v16 = vmax.f32 %v1513_v49, %v1555_v54  ;;  %v1580_v62 = vmax.f32 %v1495_v18, %v1548_v33 }
 0x236   :  { %v1416_v15 = vadd.f32 %v1415_v14, %v2284_v58  ;;  %v1527_v20 = vadd.f32 %v1526_v10, %v1414_v13  ;;  %v1528_v21 = vpop.f32.mrf.mxu1  ;;  %v1560_v27 = vmul.f32 0.2, %v1525_v9  ;;  %v1591_v51 = vmax.f32 %v1523_v12, %v1559_v36 }
 0x237   :  { %v1394_v10 = vadd.f32 %v1393_v44, %v2280_v57  ;;  %v1386_v14 = vadd.f32 %v1385_v55, %v2284_v58  ;;  %v1589_v44 = vmax.f32 %v1517_v52, %v1557_v56  ;;  %v1586_v12 = vmax.f32 %v1509_v3, %v1554_v34 }
 0x238   :  { %v1529_v31 = vadd.f32 %v1528_v21, %v1416_v15  ;;  %v1561_v59 = vmul.f32 0.2, %v1527_v20  ;;  %v1592_v53 = vmax.f32 %v1525_v9, %v1560_v27  ;;  %v1609_v15 = vpack.c.bf16 %v1590_v4, %v1588_v6 }
 0x239   :  { %v1507_v8 = vadd.f32 %v2350_v45, %v1394_v10  ;;  %v1499_v9 = vadd.f32 %v2344_v41, %v1386_v14  ;;  %v1503_v55 = vadd.f32 %v2348_v42, %v1390_v47  ;;  %v1608_v23 = vpack.c.bf16 %v1589_v44, %v1587_v16 }
 0x23a   :  { %v1562_v63 = vmul.f32 0.2, %v1529_v31  ;;  %v1593_v1 = vmax.f32 %v1527_v20, %v1561_v59  ;;  %v1584_v20 = vmax.f32 %v1505_v46, %v1552_v43  ;;  %v1380_v41 = vadd.f32 %v2330_v28, %v2280_v57 }
 0x23b   :  { %v1553_v21 = vmul.f32 0.2, %v1507_v8  ;;  %v1550_v26 = vmul.f32 0.2, %v1499_v9  ;;  %v1551_v27 = vmul.f32 0.2, %v1503_v55  ;;  %v1372_v42 = vadd.f32 %v2317_v11, %v2284_v58 }
 0x23c   :  { %v1594_v50 = vmax.f32 %v1529_v31, %v1562_v63  ;;  %v1610_v13 = vpack.c.bf16 %v1593_v1, %v1591_v51  ;;  %v1607_v45 = vpack.c.bf16 %v1586_v12, %v1584_v20  ;;  %v1497_v31 = vadd.f32 %v2340_v39, %v1384_v60 }
 0x23d   :  { %v1585_v37 = vmax.f32 %v1507_v8, %v1553_v21  ;;  %v1582_v36 = vmax.f32 %v1499_v9, %v1550_v26  ;;  %v1493_v22 = vadd.f32 %v2332_v30, %v1380_v41  ;;  %v1583_v59 = vmax.f32 %v1503_v55, %v1551_v27  ;;  %v1616_v30 = vpop.permute.xlu0 %1615 }
 0x23e   :  { %v1611_v7 = vpack.c.bf16 %v1594_v50, %v1592_v53  ;;  %v1485_v61 = vadd.f32 %v2319_v17, %v1372_v42  ;;  %v1549_v57 = vmul.f32 0.2, %v1497_v31  ;;  %v1546_v63 = vmul.f32 0.2, %v1489_v35 }
 0x23f   :  { %v1606_v28 = vpack.c.bf16 %v1585_v37, %v1583_v59  ;;  %v1605_v52 = vpack.c.bf16 %v1582_v36, %v1580_v62  ;;  %v1547_v1 = vmul.f32 0.2, %v1493_v22  ;;  %v1816_v17 = vcombine.low %v2290_v2, %v2290_v2 }
 0x240   :  { %1625 = vmatprep.subr.bf16.mxu0 %v1611_v7  ;;  %v1544_v58 = vmul.f32 0.2, %v1485_v61  ;;  %v1581_v11 = vmax.f32 %v1497_v31, %v1549_v57  ;;  %v1578_v39 = vmax.f32 %v1489_v35, %v1546_v63 }
 0x241   :  { %1626 = vmatpush1.bf16.xpose.msra.mxu0 %v1610_v13  ;;  %v1579_v3 = vmax.f32 %v1493_v22, %v1547_v1 }
 0x242   :  { %1627 = vmatprep.subr.bf16.mxu0 %v1609_v15  ;;  %v1576_v4 = vmax.f32 %v1485_v61, %v1544_v58 }
 0x243   :  { %v1604_v24 = vpack.c.bf16 %v1581_v11, %v1579_v3 }
 0x244   :  { %v1603_v53 = vpack.c.bf16 %v1578_v39, %v1576_v4 }
 0x249   :  { %1628 = vmatpush1.bf16.xpose.msra.mxu0 %v1608_v23 }
 0x24a   :  { %1629 = vmatprep.subr.bf16.mxu0 %v1607_v45 }
 0x251   :  { %1630 = vmatpush1.bf16.xpose.msra.mxu0 %v1606_v28 }
 0x252   :  { %1631 = vmatprep.subr.bf16.mxu0 %v1605_v52 }
 0x259   :  { %1632 = vmatpush1.bf16.xpose.msra.mxu0 %v1604_v24 }
 0x25a   :  { %1633 = vmatprep.subr.bf16.mxu0 %v1603_v53 }
 0x261   :  { %1634 = vmatpush1.bf16.xpose.msra.mxu0 %v2342_v40 }
 0x262   :  { %1635 = vmatprep.subr.bf16.mxu0 %v2328_v25 }
 0x269   :  { %1636 = vmatpush1.bf16.xpose.msra.mxu0 %v2321_v19 }
 0x26a   :  { %1637 = vmatprep.subr.bf16.mxu0 %v2314_v5 }
 0x271   :  { %1638 = vmatpush1.bf16.xpose.msra.mxu0 %v2311_v0 }
 0x272   :  { %1639 = vmatprep.subr.bf16.mxu0 %v2306_v38 }
 0x279   :  { %1640 = vmatpush1.bf16.xpose.msra.mxu0 %v2302_v29 }
 0x280   :  { %1658 = vmatmul.mubr.bf16.vlgmr.msra.gmra.mxu0 %v1816_v17 }
 0x340   :  { %v1659_v50 = vpop.f32.mrf.mxu0 }
 0x341   :  { %v1660_v49 = vadd.f32 %v1659_v50, %v1616_v30 }
 0x342   :  { %v1661_v40 = vpop.f32.mrf.mxu0 }
 0x343   :  { %v1665_v51 = vsub.f32 0.0, %v1660_v49 }
 0x344   :  { %v1662_v25 = vpop.f32.mrf.mxu0 }
 0x345   :  { %v1666_v46 = vmul.f32 1.442695, %v1665_v51 }
 0x346   :  { %v1663_v19 = vpop.f32.mrf.mxu0 }
 0x347   :  { %2022 = vpow2.f32 %v1666_v46 }
 0x354   :  { %v2023_v5 = vpop.eup %2022 }
 0x355   :  { %v1668_v6 = vadd.f32 1.0, %v2023_v5 }
 0x357   :  { %2024 = vrcp.f32 %v1668_v6 }
 0x364   :  { %v2025_v29 = vpop.eup %2024 }
 0x365   :  { %1671 = vst [vmem:[#allocation8] sm:$0xff] %v2025_v29 }
 0x366   :  { %2097 = shalt.err (!%p2094_p5)
}
 0x367   :  { %1681 = dma.vmem_to_hbm [thread:$0]  %s1679_s22, 128, %s2403_s7, [#allocation4]  }
 0x368   :  { %2110 = dma.done.wait [#allocation4], 128  }
 0x369   :  { %2111 = vsyncadd [#allocation4], 4294967168 }
 0x36a   :  { %1685 = vsyncpa [#allocation3], 1 }
 0x36b   :  { %1686 = vsyncpa [#allocation6], 1 }
 0x36c   :  { %1687 = vsyncpa [#allocation4], 1 }

</bundles_post_ra>
